<compile_context>
chip_gen: v7x
topology: tpu7x:2x2x1
jax: 0.10.0
libtpu: 0.0.40
codegen_flags: <defaults>
</compile_context>

<pallas_src>
import jax
import jax.numpy as jnp
from jax import lax
from jax.experimental import pallas as pl
from jax.experimental.pallas import tpu as pltpu


# ----------------------------- Pallas kernel ------------------------------ #
def _double_conv_kernel(x_ref, w1_ref, s1_ref, b1_ref, w2_ref, s2_ref, b2_ref,
                        o_ref, y1pad_ref):
    """DoubleConv: conv3x3 -> BN(eval) -> ReLU -> conv3x3 -> BN(eval) -> ReLU.

    Per grid step (nb batch images):
      x_ref   : (nb, H+2, W*Cin)  bf16, lane-dense, channel-concat [x2|x1]
                already merged and height halo pre-padded in the wrapper.
      w1_ref  : (3, W*Cin, W*Cmid)  bf16 block-banded row weights
      s1/b1   : (1, W*Cmid)   f32 folded BN1 scale / bias (tiled over W)
      w2_ref  : (3, W*Cmid, W*Cout) bf16 block-banded row weights
      s2/b2   : (1, W*Cout)   f32 folded BN2 scale / bias
      o_ref   : (nb, H, W*Cout) f32 output, lane-dense
      y1pad_ref : VMEM (nb, H+2, W*Cmid) bf16 height-padded intermediate
    """
    nb, hp2, wcin = x_ref.shape
    h = hp2 - 2
    wcmid = w1_ref.shape[2]
    wcout = w2_ref.shape[2]

    # conv1 + BN1(eval) + ReLU.  kx taps and width zero-padding are folded into
    # the block-banded row weights; batch images are stacked along M so each ky
    # tap is a single (nb*H, W*Cin) x (W*Cin, W*Cmid) dense MXU matmul.
    acc1 = jnp.zeros((nb * h, wcmid), jnp.float32)
    for ky in range(3):
        xk = x_ref[:, ky:ky + h, :].reshape(nb * h, wcin)
        acc1 = acc1 + jnp.dot(xk, w1_ref[ky], preferred_element_type=jnp.float32)
    y1 = jnp.maximum(acc1 * s1_ref[...] + b1_ref[...], 0.0)

    # Height-pad the intermediate for conv2.  Only the 2 halo rows are zeroed.
    # (Zeroed every step rather than once at program_id(0)==0: with a
    # "parallel" grid each megacore TensorCore owns its own scratch and only a
    # subset of program ids, so a zero-once guard would be unsound.)
    zrow = jnp.zeros((nb, 1, wcmid), y1pad_ref.dtype)
    y1pad_ref[:, 0:1, :] = zrow
    y1pad_ref[:, h + 1:h + 2, :] = zrow
    y1pad_ref[:, 1:h + 1, :] = y1.reshape(nb, h, wcmid).astype(y1pad_ref.dtype)

    # conv2 + BN2(eval) + ReLU; lane-dense (multiple-of-128) output store.
    acc2 = jnp.zeros((nb * h, wcout), jnp.float32)
    for ky in range(3):
        yk = y1pad_ref[:, ky:ky + h, :].reshape(nb * h, wcmid)
        acc2 = acc2 + jnp.dot(yk, w2_ref[ky], preferred_element_type=jnp.float32)
    y2 = jnp.maximum(acc2 * s2_ref[...] + b2_ref[...], 0.0)
    o_ref[...] = y2.reshape(nb, h, wcout).astype(o_ref.dtype)


# --------------------------- wrapper helpers ------------------------------- #
def _pick_batch_block(n, h):
    """Images per grid step: grows the MXU M dim (nb*H).

    Prefer >= 2 grid steps when that still yields nb*H >= 128 (keeps both v7x
    TensorCores busy); otherwise take the largest batch block with nb*H <= 512,
    which at toy sizes collapses the batch into one step and amortizes the
    ~0.35 us fixed per-step pipeline cost.
    """
    divisors = [d for d in range(1, n + 1) if n % d == 0]
    for d in divisors:
        if d * h >= 128 and n // d >= 2:
            return d
    best = 1
    for d in divisors:
        if d * h <= 512:
            best = d
    return best


def _pick_vmem_limit(required_bytes):
    """Per-generation scoped-VMEM budget (v7x 64 MiB physical vs 128 MiB)."""
    try:
        cap = int(getattr(pltpu.get_tpu_info(), "vmem_capacity_bytes", 64 << 20))
    except Exception:
        cap = 64 << 20                       # assume the smallest (v7x-like)
    budget = min(cap * 3 // 4, 100 << 20)    # <=48 MiB v7x, <=96 MiB v5e/v6e
    return int(min(max(2 * required_bytes + (8 << 20), 32 << 20), budget))


def double_conv_pallas(xr, w1r, s1t, b1t, w2r, s2t, b2t, *,
                       single_buffer_weights=True):
    n, hp2, wcin = xr.shape
    h = hp2 - 2
    wcmid = w1r.shape[2]
    wcout = w2r.shape[2]

    nb = _pick_batch_block(n, h)
    grid = (n // nb,)

    # As-performed (block-banded) flop count; advisory only.
    flops = 2 * n * h * 3 * (wcin * wcmid + wcmid * wcout)
    bytes_accessed = (2 * (xr.size + w1r.size + w2r.size)
                      + 4 * (s1t.size + b1t.size + s2t.size + b2t.size)
                      + 4 * n * h * wcout)
    cost = pl.CostEstimate(flops=flops, transcendentals=0,
                           bytes_accessed=bytes_accessed)

    def const_spec(shape, index_map):
        # Grid-invariant blocks (weights, BN scale/bias): request
        # single-buffering; double-buffering them is pure VMEM waste.
        if single_buffer_weights and hasattr(pl, "Buffered"):
            try:
                return pl.BlockSpec(shape, index_map,
                                    pipeline_mode=pl.Buffered(1))
            except Exception:
                pass
        return pl.BlockSpec(shape, index_map)

    in_specs = [
        pl.BlockSpec((nb, hp2, wcin), lambda i: (i, 0, 0)),
        const_spec((3, wcin, wcmid), lambda i: (0, 0, 0)),
        const_spec((1, wcmid), lambda i: (0, 0)),
        const_spec((1, wcmid), lambda i: (0, 0)),
        const_spec((3, wcmid, wcout), lambda i: (0, 0, 0)),
        const_spec((1, wcout), lambda i: (0, 0)),
        const_spec((1, wcout), lambda i: (0, 0)),
    ]
    out_spec = pl.BlockSpec((nb, h, wcout), lambda i: (i, 0, 0))

    # VMEM working-set estimate (weights counted double-buffered to stay safe
    # if the single-buffer request is not honored).
    need = (2 * nb * hp2 * wcin * 2          # input blocks, bf16, 2 buffers
            + 2 * nb * h * wcout * 4         # output blocks, f32, 2 buffers
            + 2 * 2 * (w1r.size + w2r.size)  # banded weights, bf16
            + 2 * 4 * (s1t.size + b1t.size + s2t.size + b2t.size)
            + nb * hp2 * wcmid * 2)          # y1 pad scratch, bf16
    vmem_limit = _pick_vmem_limit(need)

    return pl.pallas_call(
        _double_conv_kernel,
        out_shape=jax.ShapeDtypeStruct((n, h, wcout), jnp.float32),
        grid_spec=pltpu.PrefetchScalarGridSpec(
            num_scalar_prefetch=0,
            grid=grid,
            in_specs=in_specs,
            out_specs=out_spec,
            scratch_shapes=[pltpu.VMEM((nb, hp2, wcmid), jnp.bfloat16)],
        ),
        compiler_params=pltpu.CompilerParams(
            dimension_semantics=("parallel",),
            vmem_limit_bytes=vmem_limit,
        ),
        cost_estimate=cost,
    )(xr, w1r, s1t, b1t, w2r, s2t, b2t)


# ------------------------------- JAX glue ---------------------------------- #
def _fold_row_weights(w_hwio, Wsp):
    """(kh, kw, Cin, Cout) HWIO conv weights -> (kh, Wsp*Cin, Wsp*Cout).

    out[ky, wi*Cin+ci, wo*Cout+co] = w[ky, wi-wo+kw//2, ci, co] when that kx
    tap exists, else 0.  Folds the kx taps and the width-direction zero
    padding into a block-banded matrix so one conv row is one dense matmul.
    """
    kh, kw, cin, cout = w_hwio.shape
    wi = jnp.arange(Wsp)[:, None]
    wo = jnp.arange(Wsp)[None, :]
    kx = wi - wo + kw // 2
    valid = (kx >= 0) & (kx < kw)
    g = w_hwio[:, jnp.clip(kx, 0, kw - 1), :, :]         # (kh, Wsp, Wsp, Cin, Cout)
    g = jnp.where(valid[None, :, :, None, None], g, 0.0)
    g = jnp.transpose(g, (0, 1, 3, 2, 4))                # (kh, wi, Cin, wo, Cout)
    return g.reshape(kh, Wsp * cin, Wsp * cout)


def upsample_bilinear_x2_align_corners(x_nhwc):
    """nn.Upsample(scale_factor=2, mode='bilinear', align_corners=True), NHWC."""
    N, H, W, C = x_nhwc.shape
    Ho, Wo = 2 * H, 2 * W

    def coords(n_in, n_out):
        if n_in == 1:
            return (jnp.zeros((n_out,), jnp.float32),
                    jnp.zeros((n_out,), jnp.int32),
                    jnp.zeros((n_out,), jnp.int32))
        pos = jnp.arange(n_out, dtype=jnp.float32) * (n_in - 1) / (n_out - 1)
        lo = jnp.floor(pos).astype(jnp.int32)
        hi = jnp.minimum(lo + 1, n_in - 1)
        return pos - lo.astype(jnp.float32), lo, hi

    fy, y0, y1 = coords(H, Ho)
    fx, x0, x1 = coords(W, Wo)
    xh = (x_nhwc[:, y0, :, :] * (1.0 - fy)[None, :, None, None]
          + x_nhwc[:, y1, :, :] * fy[None, :, None, None])
    out = (xh[:, :, x0, :] * (1.0 - fx)[None, None, :, None]
           + xh[:, :, x1, :] * fx[None, None, :, None])
    return out


def decoder_block_forward(x1_nchw, x2_nchw, params, *, single_buffer_weights=True):
    """DecoderBlock.forward (bilinear=True): up(x1) -> pad -> cat([x2,x1]) -> DoubleConv."""
    w1_hwio, s1, b1, w2_hwio, s2, b2 = params
    x1 = jnp.transpose(x1_nchw, (0, 2, 3, 1))   # NCHW -> NHWC
    x2 = jnp.transpose(x2_nchw, (0, 2, 3, 1))
    x1 = upsample_bilinear_x2_align_corners(x1)

    diffY = x2.shape[1] - x1.shape[1]
    diffX = x2.shape[2] - x1.shape[2]
    if diffY != 0 or diffX != 0:
        x1 = jnp.pad(x1, ((0, 0),
                          (diffY // 2, diffY - diffY // 2),
                          (diffX // 2, diffX - diffX // 2),
                          (0, 0)))

    N, H, W, C2 = x2.shape
    Cmid = w1_hwio.shape[3]
    Cout = w2_hwio.shape[3]

    # torch.cat([x2, x1], dim=1) -> NHWC channel concat, then one lane-dense
    # (N, H+2, W*Cin) bf16 slab with the conv1 height halo pre-padded, so the
    # kernel needs no input pad scratch and conv1 is one matmul per ky tap.
    x = jnp.concatenate([x2, x1], axis=-1)
    x = jnp.pad(x, ((0, 0), (1, 1), (0, 0), (0, 0)))
    Cin = x.shape[-1]
    xr = x.reshape(N, H + 2, W * Cin).astype(jnp.bfloat16)

    # Block-banded row weights (bf16 on the MXU).
    w1r = _fold_row_weights(w1_hwio, W).astype(jnp.bfloat16)   # (3, W*Cin,  W*Cmid)
    w2r = _fold_row_weights(w2_hwio, W).astype(jnp.bfloat16)   # (3, W*Cmid, W*Cout)

    # BN scale/bias tiled across W so the lane axis is W*C (kept in f32).
    s1t = jnp.tile(s1.reshape(-1), W).reshape(1, W * Cmid).astype(jnp.float32)
    b1t = jnp.tile(b1.reshape(-1), W).reshape(1, W * Cmid).astype(jnp.float32)
    s2t = jnp.tile(s2.reshape(-1), W).reshape(1, W * Cout).astype(jnp.float32)
    b2t = jnp.tile(b2.reshape(-1), W).reshape(1, W * Cout).astype(jnp.float32)

    out = double_conv_pallas(xr, w1r, s1t, b1t, w2r, s2t, b2t,
                             single_buffer_weights=single_buffer_weights)
    out = out.reshape(N, H, W, Cout)
    return jnp.transpose(out, (0, 3, 1, 2))     # back to NCHW


# ------------------------- pure-JAX reference ------------------------------ #
def _ref_double_conv(x_nhwc, w1_hwio, s1, b1, w2_hwio, s2, b2):
    """lax.conv reference with the same bf16 operand rounding / f32 accumulation."""
    dn = ('NHWC', 'HWIO', 'NHWC')
    y = lax.conv_general_dilated(
        x_nhwc.astype(jnp.bfloat16), w1_hwio.astype(jnp.bfloat16), (1, 1), 'SAME',
        dimension_numbers=dn, preferred_element_type=jnp.float32)
    y = jnp.maximum(y * s1.reshape(1, 1, 1, -1) + b1.reshape(1, 1, 1, -1), 0.0)
    y = lax.conv_general_dilated(
        y.astype(jnp.bfloat16), w2_hwio.astype(jnp.bfloat16), (1, 1), 'SAME',
        dimension_numbers=dn, preferred_element_type=jnp.float32)
    y = jnp.maximum(y * s2.reshape(1, 1, 1, -1) + b2.reshape(1, 1, 1, -1), 0.0)
    return y


# ---------------------------------- main ----------------------------------- #
if __name__ == "__main__":
    # DecoderBlock(in_channels=8, out_channels=8, kernel_size=3, bilinear=True)
    in_channels, out_channels = 8, 8
    mid_channels = in_channels // 2                     # DoubleConv mid
    N = 2
    C1, H1, W1 = in_channels // 2, 8, 8                 # x1 (to be upsampled x2)
    C2, H2, W2 = in_channels - C1, 16, 16               # x2 (skip connection)
    Cin_total = C1 + C2                                 # == in_channels
    eps = 1e-5

    key = jax.random.PRNGKey(0)
    (kx1, kx2, kw1, kw2, kg1, kb1, km1, kv1,
     kg2, kb2, km2, kv2) = jax.random.split(key, 12)

    x1 = jax.random.normal(kx1, (N, C1, H1, W1), jnp.float32)   # NCHW, like PyTorch
    x2 = jax.random.normal(kx2, (N, C2, H2, W2), jnp.float32)

    # Conv weights in HWIO (bias=False, as in DoubleConv)
    w1_hwio = jax.random.normal(kw1, (3, 3, Cin_total, mid_channels), jnp.float32) * 0.1
    w2_hwio = jax.random.normal(kw2, (3, 3, mid_channels, out_channels), jnp.float32) * 0.1

    # BatchNorm params + running stats (eval mode), folded to scale/bias
    g1 = 1.0 + 0.1 * jax.random.normal(kg1, (mid_channels,), jnp.float32)
    be1 = 0.1 * jax.random.normal(kb1, (mid_channels,), jnp.float32)
    rm1 = 0.1 * jax.random.normal(km1, (mid_channels,), jnp.float32)
    rv1 = jax.random.uniform(kv1, (mid_channels,), jnp.float32, 0.5, 1.5)
    g2 = 1.0 + 0.1 * jax.random.normal(kg2, (out_channels,), jnp.float32)
    be2 = 0.1 * jax.random.normal(kb2, (out_channels,), jnp.float32)
    rm2 = 0.1 * jax.random.normal(km2, (out_channels,), jnp.float32)
    rv2 = jax.random.uniform(kv2, (out_channels,), jnp.float32, 0.5, 1.5)

    s1 = g1 / jnp.sqrt(rv1 + eps); b1 = be1 - rm1 * s1
    s2 = g2 / jnp.sqrt(rv2 + eps); b2 = be2 - rm2 * s2
    params = (w1_hwio, s1, b1, w2_hwio, s2, b2)

    def run(single_buffer_weights):
        fwd = jax.jit(lambda a, b, p: decoder_block_forward(
            a, b, p, single_buffer_weights=single_buffer_weights))
        return jax.block_until_ready(fwd(x1, x2, params))

    try:
        out = run(True)
    except Exception:
        # pl.Buffered(1) pipeline_mode not supported by this Pallas build;
        # fall back to the default double-buffered pipeline (still correct).
        out = run(False)

    assert out.shape == (N, out_channels, H2, W2), out.shape

    # Cross-check the Pallas DoubleConv against lax.conv (same bf16 rounding).
    x1_u = upsample_bilinear_x2_align_corners(jnp.transpose(x1, (0, 2, 3, 1)))
    x_cat = jnp.concatenate([jnp.transpose(x2, (0, 2, 3, 1)), x1_u], axis=-1)
    ref = _ref_double_conv(x_cat, w1_hwio, s1, b1, w2_hwio, s2, b2)
    ref = jnp.transpose(ref, (0, 3, 1, 2))
    assert jnp.allclose(out, ref, rtol=1e-3, atol=1e-3), \
        float(jnp.max(jnp.abs(out - ref)))

    print("KERNEL_OK")
</pallas_src>

<mosaic_0001>
module attributes {stable_mosaic.version = 11 : i64} {
  func.func @_double_conv_kernel(%arg0: i32, %arg1: memref<2x18x128xbf16, #tpu.memory_space<vmem>>, %arg2: memref<3x128x64xbf16, #tpu.memory_space<vmem>>, %arg3: memref<1x64xf32, #tpu.memory_space<vmem>>, %arg4: memref<1x64xf32, #tpu.memory_space<vmem>>, %arg5: memref<3x64x128xbf16, #tpu.memory_space<vmem>>, %arg6: memref<1x128xf32, #tpu.memory_space<vmem>>, %arg7: memref<1x128xf32, #tpu.memory_space<vmem>>, %arg8: memref<2x16x128xf32, #tpu.memory_space<vmem>>, %arg9: memref<2x18x64xbf16, #tpu.memory_space<vmem>>) attributes {dimension_semantics = [#tpu.dimension_semantics<parallel>], iteration_bounds = array<i64: 1>, scalar_prefetch = 0 : i64, scratch_operands = 1 : i64, tpu.core_type = #tpu.core_type<tc>, window_params = [{transform_indices = @transform_0, window_bounds = array<i64: 2, 18, 128>}, {pipeline_mode = #tpu.pipeline_mode<synchronous>, transform_indices = @transform_1, window_bounds = array<i64: 3, 128, 64>}, {pipeline_mode = #tpu.pipeline_mode<synchronous>, transform_indices = @transform_2, window_bounds = array<i64: 1, 64>}, {pipeline_mode = #tpu.pipeline_mode<synchronous>, transform_indices = @transform_3, window_bounds = array<i64: 1, 64>}, {pipeline_mode = #tpu.pipeline_mode<synchronous>, transform_indices = @transform_4, window_bounds = array<i64: 3, 64, 128>}, {pipeline_mode = #tpu.pipeline_mode<synchronous>, transform_indices = @transform_5, window_bounds = array<i64: 1, 128>}, {pipeline_mode = #tpu.pipeline_mode<synchronous>, transform_indices = @transform_6, window_bounds = array<i64: 1, 128>}, {transform_indices = @transform_7, window_bounds = array<i64: 2, 16, 128>}]} {
    %cst = arith.constant 0.000000e+00 : f32
    %0 = vector.broadcast %cst : f32 to vector<32x64xf32>
    %c0 = arith.constant 0 : index
    %c0_0 = arith.constant 0 : index
    %c0_1 = arith.constant 0 : index
    %1 = vector.load %arg1[%c0, %c0_0, %c0_1] : memref<2x18x128xbf16, #tpu.memory_space<vmem>>, vector<2x16x128xbf16>
    %2 = vector.shape_cast %1 : vector<2x16x128xbf16> to vector<32x128xbf16>
    %c0_2 = arith.constant 0 : index
    %c0_3 = arith.constant 0 : index
    %c0_4 = arith.constant 0 : index
    %3 = vector.load %arg2[%c0_2, %c0_3, %c0_4] : memref<3x128x64xbf16, #tpu.memory_space<vmem>>, vector<1x128x64xbf16>
    %4 = vector.shape_cast %3 : vector<1x128x64xbf16> to vector<128x64xbf16>
    %cst_5 = arith.constant dense<0.000000e+00> : vector<32x64xf32>
    %5 = tpu.matmul %2, %4, %cst_5 {dimension_numbers = #tpu.dot_dimension_numbers<[1], [0], [0], [1], [0, 0, 1, 1], [], []>} : vector<32x128xbf16>, vector<128x64xbf16>, vector<32x64xf32> -> vector<32x64xf32>
    %6 = arith.addf %0, %5 : vector<32x64xf32>
    %c0_6 = arith.constant 0 : index
    %c1 = arith.constant 1 : index
    %c0_7 = arith.constant 0 : index
    %7 = vector.load %arg1[%c0_6, %c1, %c0_7] : memref<2x18x128xbf16, #tpu.memory_space<vmem>>, vector<2x16x128xbf16>
    %8 = vector.shape_cast %7 : vector<2x16x128xbf16> to vector<32x128xbf16>
    %c1_8 = arith.constant 1 : index
    %c0_9 = arith.constant 0 : index
    %c0_10 = arith.constant 0 : index
    %9 = vector.load %arg2[%c1_8, %c0_9, %c0_10] : memref<3x128x64xbf16, #tpu.memory_space<vmem>>, vector<1x128x64xbf16>
    %10 = vector.shape_cast %9 : vector<1x128x64xbf16> to vector<128x64xbf16>
    %cst_11 = arith.constant dense<0.000000e+00> : vector<32x64xf32>
    %11 = tpu.matmul %8, %10, %cst_11 {dimension_numbers = #tpu.dot_dimension_numbers<[1], [0], [0], [1], [0, 0, 1, 1], [], []>} : vector<32x128xbf16>, vector<128x64xbf16>, vector<32x64xf32> -> vector<32x64xf32>
    %12 = arith.addf %6, %11 : vector<32x64xf32>
    %c0_12 = arith.constant 0 : index
    %c2 = arith.constant 2 : index
    %c0_13 = arith.constant 0 : index
    %13 = vector.load %arg1[%c0_12, %c2, %c0_13] : memref<2x18x128xbf16, #tpu.memory_space<vmem>>, vector<2x16x128xbf16>
    %14 = vector.shape_cast %13 : vector<2x16x128xbf16> to vector<32x128xbf16>
    %c2_14 = arith.constant 2 : index
    %c0_15 = arith.constant 0 : index
    %c0_16 = arith.constant 0 : index
    %15 = vector.load %arg2[%c2_14, %c0_15, %c0_16] : memref<3x128x64xbf16, #tpu.memory_space<vmem>>, vector<1x128x64xbf16>
    %16 = vector.shape_cast %15 : vector<1x128x64xbf16> to vector<128x64xbf16>
    %cst_17 = arith.constant dense<0.000000e+00> : vector<32x64xf32>
    %17 = tpu.matmul %14, %16, %cst_17 {dimension_numbers = #tpu.dot_dimension_numbers<[1], [0], [0], [1], [0, 0, 1, 1], [], []>} : vector<32x128xbf16>, vector<128x64xbf16>, vector<32x64xf32> -> vector<32x64xf32>
    %18 = arith.addf %12, %17 : vector<32x64xf32>
    %c0_18 = arith.constant 0 : index
    %c0_19 = arith.constant 0 : index
    %19 = vector.load %arg3[%c0_18, %c0_19] : memref<1x64xf32, #tpu.memory_space<vmem>>, vector<1x64xf32>
    %20 = vector.broadcast %19 : vector<1x64xf32> to vector<32x64xf32>
    %21 = arith.mulf %18, %20 : vector<32x64xf32>
    %c0_20 = arith.constant 0 : index
    %c0_21 = arith.constant 0 : index
    %22 = vector.load %arg4[%c0_20, %c0_21] : memref<1x64xf32, #tpu.memory_space<vmem>>, vector<1x64xf32>
    %23 = vector.broadcast %22 : vector<1x64xf32> to vector<32x64xf32>
    %24 = arith.addf %21, %23 : vector<32x64xf32>
    %cst_22 = arith.constant 0.000000e+00 : f32
    %25 = vector.broadcast %cst_22 : f32 to vector<32x64xf32>
    %26 = arith.maximumf %24, %25 : vector<32x64xf32>
    %cst_23 = arith.constant 0.000000e+00 : bf16
    %27 = vector.broadcast %cst_23 : bf16 to vector<2x1x64xbf16>
    %c0_24 = arith.constant 0 : index
    %c0_25 = arith.constant 0 : index
    %c0_26 = arith.constant 0 : index
    %28 = vector.load %arg9[%c0_24, %c0_25, %c0_26] : memref<2x18x64xbf16, #tpu.memory_space<vmem>>, vector<2x1x64xbf16>
    tpu.vector_store %arg9[%c0_24, %c0_25, %c0_26], %27 {strides = array<i32>} : memref<2x18x64xbf16, #tpu.memory_space<vmem>>, vector<2x1x64xbf16>,
    %c0_27 = arith.constant 0 : index
    %c17 = arith.constant 17 : index
    %c0_28 = arith.constant 0 : index
    %29 = vector.load %arg9[%c0_27, %c17, %c0_28] : memref<2x18x64xbf16, #tpu.memory_space<vmem>>, vector<2x1x64xbf16>
    tpu.vector_store %arg9[%c0_27, %c17, %c0_28], %27 {strides = array<i32>} : memref<2x18x64xbf16, #tpu.memory_space<vmem>>, vector<2x1x64xbf16>,
    %30 = vector.shape_cast %26 : vector<32x64xf32> to vector<2x16x64xf32>
    %31 = arith.truncf %30 : vector<2x16x64xf32> to vector<2x16x64xbf16>
    %c0_29 = arith.constant 0 : index
    %c1_30 = arith.constant 1 : index
    %c0_31 = arith.constant 0 : index
    %32 = vector.load %arg9[%c0_29, %c1_30, %c0_31] : memref<2x18x64xbf16, #tpu.memory_space<vmem>>, vector<2x16x64xbf16>
    tpu.vector_store %arg9[%c0_29, %c1_30, %c0_31], %31 {strides = array<i32>} : memref<2x18x64xbf16, #tpu.memory_space<vmem>>, vector<2x16x64xbf16>,
    %cst_32 = arith.constant 0.000000e+00 : f32
    %33 = vector.broadcast %cst_32 : f32 to vector<32x128xf32>
    %c0_33 = arith.constant 0 : index
    %c0_34 = arith.constant 0 : index
    %c0_35 = arith.constant 0 : index
    %34 = vector.load %arg9[%c0_33, %c0_34, %c0_35] : memref<2x18x64xbf16, #tpu.memory_space<vmem>>, vector<2x16x64xbf16>
    %35 = vector.shape_cast %34 : vector<2x16x64xbf16> to vector<32x64xbf16>
    %c0_36 = arith.constant 0 : index
    %c0_37 = arith.constant 0 : index
    %c0_38 = arith.constant 0 : index
    %36 = vector.load %arg5[%c0_36, %c0_37, %c0_38] : memref<3x64x128xbf16, #tpu.memory_space<vmem>>, vector<1x64x128xbf16>
    %37 = vector.shape_cast %36 : vector<1x64x128xbf16> to vector<64x128xbf16>
    %cst_39 = arith.constant dense<0.000000e+00> : vector<32x128xf32>
    %38 = tpu.matmul %35, %37, %cst_39 {dimension_numbers = #tpu.dot_dimension_numbers<[1], [0], [0], [1], [0, 0, 1, 1], [], []>} : vector<32x64xbf16>, vector<64x128xbf16>, vector<32x128xf32> -> vector<32x128xf32>
    %39 = arith.addf %33, %38 : vector<32x128xf32>
    %c0_40 = arith.constant 0 : index
    %c1_41 = arith.constant 1 : index
    %c0_42 = arith.constant 0 : index
    %40 = vector.load %arg9[%c0_40, %c1_41, %c0_42] : memref<2x18x64xbf16, #tpu.memory_space<vmem>>, vector<2x16x64xbf16>
    %41 = vector.shape_cast %40 : vector<2x16x64xbf16> to vector<32x64xbf16>
    %c1_43 = arith.constant 1 : index
    %c0_44 = arith.constant 0 : index
    %c0_45 = arith.constant 0 : index
    %42 = vector.load %arg5[%c1_43, %c0_44, %c0_45] : memref<3x64x128xbf16, #tpu.memory_space<vmem>>, vector<1x64x128xbf16>
    %43 = vector.shape_cast %42 : vector<1x64x128xbf16> to vector<64x128xbf16>
    %cst_46 = arith.constant dense<0.000000e+00> : vector<32x128xf32>
    %44 = tpu.matmul %41, %43, %cst_46 {dimension_numbers = #tpu.dot_dimension_numbers<[1], [0], [0], [1], [0, 0, 1, 1], [], []>} : vector<32x64xbf16>, vector<64x128xbf16>, vector<32x128xf32> -> vector<32x128xf32>
    %45 = arith.addf %39, %44 : vector<32x128xf32>
    %c0_47 = arith.constant 0 : index
    %c2_48 = arith.constant 2 : index
    %c0_49 = arith.constant 0 : index
    %46 = vector.load %arg9[%c0_47, %c2_48, %c0_49] : memref<2x18x64xbf16, #tpu.memory_space<vmem>>, vector<2x16x64xbf16>
    %47 = vector.shape_cast %46 : vector<2x16x64xbf16> to vector<32x64xbf16>
    %c2_50 = arith.constant 2 : index
    %c0_51 = arith.constant 0 : index
    %c0_52 = arith.constant 0 : index
    %48 = vector.load %arg5[%c2_50, %c0_51, %c0_52] : memref<3x64x128xbf16, #tpu.memory_space<vmem>>, vector<1x64x128xbf16>
    %49 = vector.shape_cast %48 : vector<1x64x128xbf16> to vector<64x128xbf16>
    %cst_53 = arith.constant dense<0.000000e+00> : vector<32x128xf32>
    %50 = tpu.matmul %47, %49, %cst_53 {dimension_numbers = #tpu.dot_dimension_numbers<[1], [0], [0], [1], [0, 0, 1, 1], [], []>} : vector<32x64xbf16>, vector<64x128xbf16>, vector<32x128xf32> -> vector<32x128xf32>
    %51 = arith.addf %45, %50 : vector<32x128xf32>
    %c0_54 = arith.constant 0 : index
    %c0_55 = arith.constant 0 : index
    %52 = vector.load %arg6[%c0_54, %c0_55] : memref<1x128xf32, #tpu.memory_space<vmem>>, vector<1x128xf32>
    %53 = vector.broadcast %52 : vector<1x128xf32> to vector<32x128xf32>
    %54 = arith.mulf %51, %53 : vector<32x128xf32>
    %c0_56 = arith.constant 0 : index
    %c0_57 = arith.constant 0 : index
    %55 = vector.load %arg7[%c0_56, %c0_57] : memref<1x128xf32, #tpu.memory_space<vmem>>, vector<1x128xf32>
    %56 = vector.broadcast %55 : vector<1x128xf32> to vector<32x128xf32>
    %57 = arith.addf %54, %56 : vector<32x128xf32>
    %cst_58 = arith.constant 0.000000e+00 : f32
    %58 = vector.broadcast %cst_58 : f32 to vector<32x128xf32>
    %59 = arith.maximumf %57, %58 : vector<32x128xf32>
    %60 = vector.shape_cast %59 : vector<32x128xf32> to vector<2x16x128xf32>
    %c0_59 = arith.constant 0 : index
    %c0_60 = arith.constant 0 : index
    %c0_61 = arith.constant 0 : index
    %61 = vector.load %arg8[%c0_59, %c0_60, %c0_61] : memref<2x16x128xf32, #tpu.memory_space<vmem>>, vector<2x16x128xf32>
    tpu.vector_store %arg8[%c0_59, %c0_60, %c0_61], %60 {strides = array<i32>} : memref<2x16x128xf32, #tpu.memory_space<vmem>>, vector<2x16x128xf32>,
    return
  }
  func.func @transform_0(%arg0: i32) -> (i32, i32, i32) {
    %c0_i32 = arith.constant 0 : i32
    %c0_i32_0 = arith.constant 0 : i32
    %c0_i32_1 = arith.constant 0 : i32
    return %arg0, %c0_i32, %c0_i32_0 : i32, i32, i32
  }
  func.func @transform_1(%arg0: i32) -> (i32, i32, i32) {
    %c0_i32 = arith.constant 0 : i32
    %c0_i32_0 = arith.constant 0 : i32
    %c0_i32_1 = arith.constant 0 : i32
    %c0_i32_2 = arith.constant 0 : i32
    return %c0_i32, %c0_i32_0, %c0_i32_1 : i32, i32, i32
  }
  func.func @transform_2(%arg0: i32) -> (i32, i32) {
    %c0_i32 = arith.constant 0 : i32
    %c0_i32_0 = arith.constant 0 : i32
    %c0_i32_1 = arith.constant 0 : i32
    return %c0_i32, %c0_i32_0 : i32, i32
  }
  func.func @transform_3(%arg0: i32) -> (i32, i32) {
    %c0_i32 = arith.constant 0 : i32
    %c0_i32_0 = arith.constant 0 : i32
    %c0_i32_1 = arith.constant 0 : i32
    return %c0_i32, %c0_i32_0 : i32, i32
  }
  func.func @transform_4(%arg0: i32) -> (i32, i32, i32) {
    %c0_i32 = arith.constant 0 : i32
    %c0_i32_0 = arith.constant 0 : i32
    %c0_i32_1 = arith.constant 0 : i32
    %c0_i32_2 = arith.constant 0 : i32
    return %c0_i32, %c0_i32_0, %c0_i32_1 : i32, i32, i32
  }
  func.func @transform_5(%arg0: i32) -> (i32, i32) {
    %c0_i32 = arith.constant 0 : i32
    %c0_i32_0 = arith.constant 0 : i32
    %c0_i32_1 = arith.constant 0 : i32
    return %c0_i32, %c0_i32_0 : i32, i32
  }
  func.func @transform_6(%arg0: i32) -> (i32, i32) {
    %c0_i32 = arith.constant 0 : i32
    %c0_i32_0 = arith.constant 0 : i32
    %c0_i32_1 = arith.constant 0 : i32
    return %c0_i32, %c0_i32_0 : i32, i32
  }
  func.func @transform_7(%arg0: i32) -> (i32, i32, i32) {
    %c0_i32 = arith.constant 0 : i32
    %c0_i32_0 = arith.constant 0 : i32
    %c0_i32_1 = arith.constant 0 : i32
    return %arg0, %c0_i32, %c0_i32_0 : i32, i32, i32
  }
}

module attributes {stable_mosaic.version = 11 : i64} {
  func.func @_double_conv_kernel(%arg0: i32, %arg1: memref<2x18x128xbf16, #tpu.memory_space<vmem>>, %arg2: memref<3x128x64xbf16, #tpu.memory_space<vmem>>, %arg3: memref<1x64xf32, #tpu.memory_space<vmem>>, %arg4: memref<1x64xf32, #tpu.memory_space<vmem>>, %arg5: memref<3x64x128xbf16, #tpu.memory_space<vmem>>, %arg6: memref<1x128xf32, #tpu.memory_space<vmem>>, %arg7: memref<1x128xf32, #tpu.memory_space<vmem>>, %arg8: memref<2x16x128xf32, #tpu.memory_space<vmem>>, %arg9: memref<2x18x64xbf16, #tpu.memory_space<vmem>>) attributes {dimension_semantics = [#tpu.dimension_semantics<parallel>], iteration_bounds = array<i64: 1>, scalar_prefetch = 0 : i64, scratch_operands = 1 : i64, tpu.core_type = #tpu.core_type<tc>, window_params = [{transform_indices = @transform_0, window_bounds = array<i64: 2, 18, 128>}, {pipeline_mode = #tpu.pipeline_mode<synchronous>, transform_indices = @transform_1, window_bounds = array<i64: 3, 128, 64>}, {pipeline_mode = #tpu.pipeline_mode<synchronous>, transform_indices = @transform_2, window_bounds = array<i64: 1, 64>}, {pipeline_mode = #tpu.pipeline_mode<synchronous>, transform_indices = @transform_3, window_bounds = array<i64: 1, 64>}, {pipeline_mode = #tpu.pipeline_mode<synchronous>, transform_indices = @transform_4, window_bounds = array<i64: 3, 64, 128>}, {pipeline_mode = #tpu.pipeline_mode<synchronous>, transform_indices = @transform_5, window_bounds = array<i64: 1, 128>}, {pipeline_mode = #tpu.pipeline_mode<synchronous>, transform_indices = @transform_6, window_bounds = array<i64: 1, 128>}, {transform_indices = @transform_7, window_bounds = array<i64: 2, 16, 128>}]} {
    %cst = arith.constant 0.000000e+00 : f32
    %0 = vector.broadcast %cst : f32 to vector<32x64xf32>
    %c0 = arith.constant 0 : index
    %c0_0 = arith.constant 0 : index
    %c0_1 = arith.constant 0 : index
    %1 = vector.load %arg1[%c0, %c0_0, %c0_1] : memref<2x18x128xbf16, #tpu.memory_space<vmem>>, vector<2x16x128xbf16>
    %2 = vector.shape_cast %1 : vector<2x16x128xbf16> to vector<32x128xbf16>
    %c0_2 = arith.constant 0 : index
    %c0_3 = arith.constant 0 : index
    %c0_4 = arith.constant 0 : index
    %3 = vector.load %arg2[%c0_2, %c0_3, %c0_4] : memref<3x128x64xbf16, #tpu.memory_space<vmem>>, vector<1x128x64xbf16>
    %4 = vector.shape_cast %3 : vector<1x128x64xbf16> to vector<128x64xbf16>
    %cst_5 = arith.constant dense<0.000000e+00> : vector<32x64xf32>
    %5 = tpu.matmul %2, %4, %cst_5 {dimension_numbers = #tpu.dot_dimension_numbers<[1], [0], [0], [1], [0, 0, 1, 1], [], []>} : vector<32x128xbf16>, vector<128x64xbf16>, vector<32x64xf32> -> vector<32x64xf32>
    %6 = arith.addf %0, %5 : vector<32x64xf32>
    %c0_6 = arith.constant 0 : index
    %c1 = arith.constant 1 : index
    %c0_7 = arith.constant 0 : index
    %7 = vector.load %arg1[%c0_6, %c1, %c0_7] : memref<2x18x128xbf16, #tpu.memory_space<vmem>>, vector<2x16x128xbf16>
    %8 = vector.shape_cast %7 : vector<2x16x128xbf16> to vector<32x128xbf16>
    %c1_8 = arith.constant 1 : index
    %c0_9 = arith.constant 0 : index
    %c0_10 = arith.constant 0 : index
    %9 = vector.load %arg2[%c1_8, %c0_9, %c0_10] : memref<3x128x64xbf16, #tpu.memory_space<vmem>>, vector<1x128x64xbf16>
    %10 = vector.shape_cast %9 : vector<1x128x64xbf16> to vector<128x64xbf16>
    %cst_11 = arith.constant dense<0.000000e+00> : vector<32x64xf32>
    %11 = tpu.matmul %8, %10, %cst_11 {dimension_numbers = #tpu.dot_dimension_numbers<[1], [0], [0], [1], [0, 0, 1, 1], [], []>} : vector<32x128xbf16>, vector<128x64xbf16>, vector<32x64xf32> -> vector<32x64xf32>
    %12 = arith.addf %6, %11 : vector<32x64xf32>
    %c0_12 = arith.constant 0 : index
    %c2 = arith.constant 2 : index
    %c0_13 = arith.constant 0 : index
    %13 = vector.load %arg1[%c0_12, %c2, %c0_13] : memref<2x18x128xbf16, #tpu.memory_space<vmem>>, vector<2x16x128xbf16>
    %14 = vector.shape_cast %13 : vector<2x16x128xbf16> to vector<32x128xbf16>
    %c2_14 = arith.constant 2 : index
    %c0_15 = arith.constant 0 : index
    %c0_16 = arith.constant 0 : index
    %15 = vector.load %arg2[%c2_14, %c0_15, %c0_16] : memref<3x128x64xbf16, #tpu.memory_space<vmem>>, vector<1x128x64xbf16>
    %16 = vector.shape_cast %15 : vector<1x128x64xbf16> to vector<128x64xbf16>
    %cst_17 = arith.constant dense<0.000000e+00> : vector<32x64xf32>
    %17 = tpu.matmul %14, %16, %cst_17 {dimension_numbers = #tpu.dot_dimension_numbers<[1], [0], [0], [1], [0, 0, 1, 1], [], []>} : vector<32x128xbf16>, vector<128x64xbf16>, vector<32x64xf32> -> vector<32x64xf32>
    %18 = arith.addf %12, %17 : vector<32x64xf32>
    %c0_18 = arith.constant 0 : index
    %c0_19 = arith.constant 0 : index
    %19 = vector.load %arg3[%c0_18, %c0_19] : memref<1x64xf32, #tpu.memory_space<vmem>>, vector<1x64xf32>
    %20 = vector.broadcast %19 : vector<1x64xf32> to vector<32x64xf32>
    %21 = arith.mulf %18, %20 : vector<32x64xf32>
    %c0_20 = arith.constant 0 : index
    %c0_21 = arith.constant 0 : index
    %22 = vector.load %arg4[%c0_20, %c0_21] : memref<1x64xf32, #tpu.memory_space<vmem>>, vector<1x64xf32>
    %23 = vector.broadcast %22 : vector<1x64xf32> to vector<32x64xf32>
    %24 = arith.addf %21, %23 : vector<32x64xf32>
    %cst_22 = arith.constant 0.000000e+00 : f32
    %25 = vector.broadcast %cst_22 : f32 to vector<32x64xf32>
    %26 = arith.maximumf %24, %25 : vector<32x64xf32>
    %cst_23 = arith.constant 0.000000e+00 : bf16
    %27 = vector.broadcast %cst_23 : bf16 to vector<2x1x64xbf16>
    %c0_24 = arith.constant 0 : index
    %c0_25 = arith.constant 0 : index
    %c0_26 = arith.constant 0 : index
    %28 = vector.load %arg9[%c0_24, %c0_25, %c0_26] : memref<2x18x64xbf16, #tpu.memory_space<vmem>>, vector<2x1x64xbf16>
    tpu.vector_store %arg9[%c0_24, %c0_25, %c0_26], %27 {strides = array<i32>} : memref<2x18x64xbf16, #tpu.memory_space<vmem>>, vector<2x1x64xbf16>,
    %c0_27 = arith.constant 0 : index
    %c17 = arith.constant 17 : index
    %c0_28 = arith.constant 0 : index
    %29 = vector.load %arg9[%c0_27, %c17, %c0_28] : memref<2x18x64xbf16, #tpu.memory_space<vmem>>, vector<2x1x64xbf16>
    tpu.vector_store %arg9[%c0_27, %c17, %c0_28], %27 {strides = array<i32>} : memref<2x18x64xbf16, #tpu.memory_space<vmem>>, vector<2x1x64xbf16>,
    %30 = vector.shape_cast %26 : vector<32x64xf32> to vector<2x16x64xf32>
    %31 = arith.truncf %30 : vector<2x16x64xf32> to vector<2x16x64xbf16>
    %c0_29 = arith.constant 0 : index
    %c1_30 = arith.constant 1 : index
    %c0_31 = arith.constant 0 : index
    %32 = vector.load %arg9[%c0_29, %c1_30, %c0_31] : memref<2x18x64xbf16, #tpu.memory_space<vmem>>, vector<2x16x64xbf16>
    tpu.vector_store %arg9[%c0_29, %c1_30, %c0_31], %31 {strides = array<i32>} : memref<2x18x64xbf16, #tpu.memory_space<vmem>>, vector<2x16x64xbf16>,
    %cst_32 = arith.constant 0.000000e+00 : f32
    %33 = vector.broadcast %cst_32 : f32 to vector<32x128xf32>
    %c0_33 = arith.constant 0 : index
    %c0_34 = arith.constant 0 : index
    %c0_35 = arith.constant 0 : index
    %34 = vector.load %arg9[%c0_33, %c0_34, %c0_35] : memref<2x18x64xbf16, #tpu.memory_space<vmem>>, vector<2x16x64xbf16>
    %35 = vector.shape_cast %34 : vector<2x16x64xbf16> to vector<32x64xbf16>
    %c0_36 = arith.constant 0 : index
    %c0_37 = arith.constant 0 : index
    %c0_38 = arith.constant 0 : index
    %36 = vector.load %arg5[%c0_36, %c0_37, %c0_38] : memref<3x64x128xbf16, #tpu.memory_space<vmem>>, vector<1x64x128xbf16>
    %37 = vector.shape_cast %36 : vector<1x64x128xbf16> to vector<64x128xbf16>
    %cst_39 = arith.constant dense<0.000000e+00> : vector<32x128xf32>
    %38 = tpu.matmul %35, %37, %cst_39 {dimension_numbers = #tpu.dot_dimension_numbers<[1], [0], [0], [1], [0, 0, 1, 1], [], []>} : vector<32x64xbf16>, vector<64x128xbf16>, vector<32x128xf32> -> vector<32x128xf32>
    %39 = arith.addf %33, %38 : vector<32x128xf32>
    %c0_40 = arith.constant 0 : index
    %c1_41 = arith.constant 1 : index
    %c0_42 = arith.constant 0 : index
    %40 = vector.load %arg9[%c0_40, %c1_41, %c0_42] : memref<2x18x64xbf16, #tpu.memory_space<vmem>>, vector<2x16x64xbf16>
    %41 = vector.shape_cast %40 : vector<2x16x64xbf16> to vector<32x64xbf16>
    %c1_43 = arith.constant 1 : index
    %c0_44 = arith.constant 0 : index
    %c0_45 = arith.constant 0 : index
    %42 = vector.load %arg5[%c1_43, %c0_44, %c0_45] : memref<3x64x128xbf16, #tpu.memory_space<vmem>>, vector<1x64x128xbf16>
    %43 = vector.shape_cast %42 : vector<1x64x128xbf16> to vector<64x128xbf16>
    %cst_46 = arith.constant dense<0.000000e+00> : vector<32x128xf32>
    %44 = tpu.matmul %41, %43, %cst_46 {dimension_numbers = #tpu.dot_dimension_numbers<[1], [0], [0], [1], [0, 0, 1, 1], [], []>} : vector<32x64xbf16>, vector<64x128xbf16>, vector<32x128xf32> -> vector<32x128xf32>
    %45 = arith.addf %39, %44 : vector<32x128xf32>
    %c0_47 = arith.constant 0 : index
    %c2_48 = arith.constant 2 : index
    %c0_49 = arith.constant 0 : index
    %46 = vector.load %arg9[%c0_47, %c2_48, %c0_49] : memref<2x18x64xbf16, #tpu.memory_space<vmem>>, vector<2x16x64xbf16>
    %47 = vector.shape_cast %46 : vector<2x16x64xbf16> to vector<32x64xbf16>
    %c2_50 = arith.constant 2 : index
    %c0_51 = arith.constant 0 : index
    %c0_52 = arith.constant 0 : index
    %48 = vector.load %arg5[%c2_50, %c0_51, %c0_52] : memref<3x64x128xbf16, #tpu.memory_space<vmem>>, vector<1x64x128xbf16>
    %49 = vector.shape_cast %48 : vector<1x64x128xbf16> to vector<64x128xbf16>
    %cst_53 = arith.constant dense<0.000000e+00> : vector<32x128xf32>
    %50 = tpu.matmul %47, %49, %cst_53 {dimension_numbers = #tpu.dot_dimension_numbers<[1], [0], [0], [1], [0, 0, 1, 1], [], []>} : vector<32x64xbf16>, vector<64x128xbf16>, vector<32x128xf32> -> vector<32x128xf32>
    %51 = arith.addf %45, %50 : vector<32x128xf32>
    %c0_54 = arith.constant 0 : index
    %c0_55 = arith.constant 0 : index
    %52 = vector.load %arg6[%c0_54, %c0_55] : memref<1x128xf32, #tpu.memory_space<vmem>>, vector<1x128xf32>
    %53 = vector.broadcast %52 : vector<1x128xf32> to vector<32x128xf32>
    %54 = arith.mulf %51, %53 : vector<32x128xf32>
    %c0_56 = arith.constant 0 : index
    %c0_57 = arith.constant 0 : index
    %55 = vector.load %arg7[%c0_56, %c0_57] : memref<1x128xf32, #tpu.memory_space<vmem>>, vector<1x128xf32>
    %56 = vector.broadcast %55 : vector<1x128xf32> to vector<32x128xf32>
    %57 = arith.addf %54, %56 : vector<32x128xf32>
    %cst_58 = arith.constant 0.000000e+00 : f32
    %58 = vector.broadcast %cst_58 : f32 to vector<32x128xf32>
    %59 = arith.maximumf %57, %58 : vector<32x128xf32>
    %60 = vector.shape_cast %59 : vector<32x128xf32> to vector<2x16x128xf32>
    %c0_59 = arith.constant 0 : index
    %c0_60 = arith.constant 0 : index
    %c0_61 = arith.constant 0 : index
    %61 = vector.load %arg8[%c0_59, %c0_60, %c0_61] : memref<2x16x128xf32, #tpu.memory_space<vmem>>, vector<2x16x128xf32>
    tpu.vector_store %arg8[%c0_59, %c0_60, %c0_61], %60 {strides = array<i32>} : memref<2x16x128xf32, #tpu.memory_space<vmem>>, vector<2x16x128xf32>,
    return
  }
  func.func @transform_0(%arg0: i32) -> (i32, i32, i32) {
    %c0_i32 = arith.constant 0 : i32
    %c0_i32_0 = arith.constant 0 : i32
    %c0_i32_1 = arith.constant 0 : i32
    return %arg0, %c0_i32, %c0_i32_0 : i32, i32, i32
  }
  func.func @transform_1(%arg0: i32) -> (i32, i32, i32) {
    %c0_i32 = arith.constant 0 : i32
    %c0_i32_0 = arith.constant 0 : i32
    %c0_i32_1 = arith.constant 0 : i32
    %c0_i32_2 = arith.constant 0 : i32
    return %c0_i32, %c0_i32_0, %c0_i32_1 : i32, i32, i32
  }
  func.func @transform_2(%arg0: i32) -> (i32, i32) {
    %c0_i32 = arith.constant 0 : i32
    %c0_i32_0 = arith.constant 0 : i32
    %c0_i32_1 = arith.constant 0 : i32
    return %c0_i32, %c0_i32_0 : i32, i32
  }
  func.func @transform_3(%arg0: i32) -> (i32, i32) {
    %c0_i32 = arith.constant 0 : i32
    %c0_i32_0 = arith.constant 0 : i32
    %c0_i32_1 = arith.constant 0 : i32
    return %c0_i32, %c0_i32_0 : i32, i32
  }
  func.func @transform_4(%arg0: i32) -> (i32, i32, i32) {
    %c0_i32 = arith.constant 0 : i32
    %c0_i32_0 = arith.constant 0 : i32
    %c0_i32_1 = arith.constant 0 : i32
    %c0_i32_2 = arith.constant 0 : i32
    return %c0_i32, %c0_i32_0, %c0_i32_1 : i32, i32, i32
  }
  func.func @transform_5(%arg0: i32) -> (i32, i32) {
    %c0_i32 = arith.constant 0 : i32
    %c0_i32_0 = arith.constant 0 : i32
    %c0_i32_1 = arith.constant 0 : i32
    return %c0_i32, %c0_i32_0 : i32, i32
  }
  func.func @transform_6(%arg0: i32) -> (i32, i32) {
    %c0_i32 = arith.constant 0 : i32
    %c0_i32_0 = arith.constant 0 : i32
    %c0_i32_1 = arith.constant 0 : i32
    return %c0_i32, %c0_i32_0 : i32, i32
  }
  func.func @transform_7(%arg0: i32) -> (i32, i32, i32) {
    %c0_i32 = arith.constant 0 : i32
    %c0_i32_0 = arith.constant 0 : i32
    %c0_i32_1 = arith.constant 0 : i32
    return %arg0, %c0_i32, %c0_i32_0 : i32, i32, i32
  }
}

</mosaic_0001>

<bundles_post_ra>
// kernel: tile.23
= control target key start
LH: loop header
LB: loop body
LE: loop exit
PB: predicated region body
PF: predicated region fallthrough
CT: control target
= control target key end

     0   :  { %2 = vsyncpa [#allocation1], 0  ;;  %s47_s6 = smov [#allocation0]   ;;  %s76_s0 = inlined_call_operand.hbm [shape: f32[4], index: 0, kind: input, shape index: {}]   ;;  %s77_s1 = inlined_call_operand.vmem [shape: f32[16,4], index: 1, kind: output, shape index: {}]  }
   0x1   :  { %s9_s7 = sshll.u32 %s47_s6, 4  ;;  %s23_s10 = scalar_lea.hbm %s76_s0, 16  ;;  %s10_s7 = int_to_ptr.vmem [resolvable:$true] %s9_s7 }
   0x2   :  { %p24_p0 = scmp.ne.s32.totalorder %s76_s0, %s23_s10  ;;  %p27_p1 = scmp.lt.u32.totalorder %s23_s10, %s76_s0 }
   0x4   :  { %p29_p2 = pnand %p27_p1, %p24_p0 }
   0x6   :  { %32 = shalt.err (!%p29_p2)
}
   0x7   :  { %s33_s15 = scalar_lea.vmem %s10_s7, 16  ;;  %s37_s16 = scalar_lea.vmem %s10_s7, 32 }
   0x8   :  { %p34_p3 = scmp.ne.s32.totalorder %s10_s7, %s33_s15  ;;  %p38_p4 = scmp.lt.s32.totalorder %s10_s7, %s10_s7 }
   0x9   :  { %p39_p5 = scmp.lt.s32.totalorder %s37_s16, %s33_s15 }
   0xb   :  { %p40_p6 = por %p39_p5, %p38_p4 }
   0xd   :  { %p41_p7 = pnand %p40_p6, %p34_p3 }
   0xf   :  { %44 = shalt.err (!%p41_p7)
}
  0x10   :  { %12 = dma.hbm_to_vmem [thread:$0]  %s76_s0, 16, %s10_s7, [#allocation1]  }
  0x11   :  { %45 = dma.done.wait [#allocation1], 16  }
  0x12   :  { %46 = vsyncadd [#allocation1], 4294967280  ;;  %v16_v0 = vld [vmem:[#allocation0] ss:$0 sm:$0xff] }
  0x13   :  { %17 = vst [vmem:[%s77_s1] sm:$0xff] %v16_v0  ;;  %21 = vst [vmem:[%s77_s1 + $0x8] sm:$0xff] %v16_v0 }
  0x14   :  { %20 = vsyncpa [#allocation1], 1 }

// kernel: tile.24
= control target key start
LH: loop header
LB: loop body
LE: loop exit
PB: predicated region body
PF: predicated region fallthrough
CT: control target
= control target key end

     0   :  { %s131_s10 = smov 60   ;;  %s132_s11 = smov 52   ;;  %vm3_vm0 = vcmask 31744   ;;  %vm9_vm1 = vcmask 523744   ;;  %vm15_vm2 = vcmask 490944   ;;  %vm21_vm3 = vcmask 458144   ;;  %s207_s0 = inlined_call_operand.vmem [shape: f32[16,4], index: 0, kind: input, shape index: {}]   ;;  %s208_s1 = inlined_call_operand.vmem [shape: f32[1,64], index: 1, kind: output, shape index: {}]  }
   0x1   :  { %v101_v0 = vld [vmem:[%s207_s0 + $0xf] sm:$0x1]   ;;  %v103_v1 = vld [vmem:[%s207_s0 + $0xd] sm:$0x1]   ;;  %v102_v2 = vld [vmem:[%s207_s0 + $0xe] sm:$0x1]  }
   0x2   :  { %7 = vrot.lane.b32.xlu0 %v101_v0, %s131_s10  ;;  %19 = vrot.lane.b32.xlu1 %v103_v1, %s132_s11  ;;  %v104_v3 = vld [vmem:[%s207_s0 + $0xc] sm:$0x1]   ;;  %s133_s16 = smov 56   ;;  %s134_s17 = smov 48   ;;  %v105_v4 = vld [vmem:[%s207_s0 + $0xb] sm:$0x1]  }
   0x3   :  { %v106_v5 = vld [vmem:[%s207_s0 + $0xa] sm:$0x1]   ;;  %v2_v6 = vld [vmem:[%s207_s0] sm:$0x1]   ;;  %s135_s24 = smov 44   ;;  %s136_s25 = smov 40  }
   0x4   :  { %4 = vst.msk [vmem:[#allocation0] sm:$0x1] %vm3_vm0, %v2_v6   ;;  %v107_v7 = vld [vmem:[%s207_s0 + $0x9] sm:$0x1]   ;;  %v108_v8 = vld [vmem:[%s207_s0 + $0x8] sm:$0x1]  }
   0x5   :  { %s137_s30 = smov 36   ;;  %s138_s2 = smov 32   ;;  %v109_v9 = vld [vmem:[%s207_s0 + $0x7] sm:$0x1]   ;;  %v110_v10 = vld [vmem:[%s207_s0 + $0x6] sm:$0x1]  }
   0x6   :  { %13 = vrot.lane.b32.xlu0 %v102_v2, %s133_s16  ;;  %25 = vrot.lane.b32.xlu1 %v104_v3, %s134_s17  ;;  %s139_s7 = smov 28   ;;  %s140_s8 = smov 24   ;;  %v111_v11 = vld [vmem:[%s207_s0 + $0x5] sm:$0x1]   ;;  %v112_v12 = vld [vmem:[%s207_s0 + $0x4] sm:$0x1]  }
   0x7   :  { %s141_s13 = smov 20   ;;  %s142_s14 = smov 16   ;;  %v113_v13 = vld [vmem:[%s207_s0 + $0x3] sm:$0x1]   ;;  %v114_v14 = vld [vmem:[%s207_s0 + $0x2] sm:$0x1]  }
   0x8   :  { %s143_s19 = smov 12   ;;  %s144_s20 = smov 8   ;;  %v115_v15 = vld [vmem:[%s207_s0 + $0x1] sm:$0x1]   ;;  %vm27_vm4 = vcmask 425344   ;;  %vm33_vm5 = vcmask 392544  }
   0x9   :  { %s145_s0 = smov 4   ;;  %vm39_vm6 = vcmask 359744   ;;  %vm45_vm7 = vcmask 326944   ;;  %vm51_vm8 = vcmask 294144   ;;  %vm57_vm9 = vcmask 261344  }
   0xa   :  { %31 = vrot.lane.b32.xlu0 %v105_v4, %s135_s24  ;;  %37 = vrot.lane.b32.xlu1 %v106_v5, %s136_s25  ;;  %vm63_vm10 = vcmask 228544   ;;  %vm69_vm11 = vcmask 195744   ;;  %vm75_vm12 = vcmask 162944   ;;  %vm81_vm13 = vcmask 130144  }
   0xb   :  { %vm87_vm14 = vcmask 97344   ;;  %vm93_vm15 = vcmask 64544  }
   0xe   :  { %43 = vrot.lane.b32.xlu0 %v107_v7, %s137_s30  ;;  %49 = vrot.lane.b32.xlu1 %v108_v8, %s138_s2 }
  0x12   :  { %55 = vrot.lane.b32.xlu0 %v109_v9, %s139_s7  ;;  %61 = vrot.lane.b32.xlu1 %v110_v10, %s140_s8 }
  0x16   :  { %67 = vrot.lane.b32.xlu0 %v111_v11, %s141_s13  ;;  %73 = vrot.lane.b32.xlu1 %v112_v12, %s142_s14 }
  0x1a   :  { %79 = vrot.lane.b32.xlu0 %v113_v13, %s143_s19  ;;  %85 = vrot.lane.b32.xlu1 %v114_v14, %s144_s20 }
  0x1e   :  { %91 = vrot.lane.b32.xlu0 %v115_v15, %s145_s0 }
  0x74   :  { %v8_v16 = vpop.permute.xlu0 %7   ;;  %v20_v17 = vpop.permute.xlu1 %19  }
  0x75   :  { %10 = vst.msk [vmem:[#allocation0] sm:$0x1] %vm9_vm1, %v8_v16  }
  0x78   :  { %v14_v18 = vpop.permute.xlu0 %13   ;;  %v26_v19 = vpop.permute.xlu1 %25  }
  0x79   :  { %16 = vst.msk [vmem:[#allocation0] sm:$0x1] %vm15_vm2, %v14_v18  }
  0x7a   :  { %22 = vst.msk [vmem:[#allocation0] sm:$0x1] %vm21_vm3, %v20_v17  }
  0x7b   :  { %28 = vst.msk [vmem:[#allocation0] sm:$0x1] %vm27_vm4, %v26_v19  }
  0x7c   :  { %v32_v20 = vpop.permute.xlu0 %31   ;;  %v38_v21 = vpop.permute.xlu1 %37  }
  0x7d   :  { %34 = vst.msk [vmem:[#allocation0] sm:$0x1] %vm33_vm5, %v32_v20  }
  0x7e   :  { %40 = vst.msk [vmem:[#allocation0] sm:$0x1] %vm39_vm6, %v38_v21  }
  0x80   :  { %v44_v22 = vpop.permute.xlu0 %43   ;;  %v50_v23 = vpop.permute.xlu1 %49  }
  0x81   :  { %46 = vst.msk [vmem:[#allocation0] sm:$0x1] %vm45_vm7, %v44_v22  }
  0x82   :  { %52 = vst.msk [vmem:[#allocation0] sm:$0x1] %vm51_vm8, %v50_v23  }
  0x84   :  { %v56_v24 = vpop.permute.xlu0 %55   ;;  %v62_v25 = vpop.permute.xlu1 %61  }
  0x85   :  { %58 = vst.msk [vmem:[#allocation0] sm:$0x1] %vm57_vm9, %v56_v24  }
  0x86   :  { %64 = vst.msk [vmem:[#allocation0] sm:$0x1] %vm63_vm10, %v62_v25  }
  0x88   :  { %v68_v26 = vpop.permute.xlu0 %67   ;;  %v74_v27 = vpop.permute.xlu1 %73  }
  0x89   :  { %70 = vst.msk [vmem:[#allocation0] sm:$0x1] %vm69_vm11, %v68_v26  }
  0x8a   :  { %76 = vst.msk [vmem:[#allocation0] sm:$0x1] %vm75_vm12, %v74_v27  }
  0x8c   :  { %v80_v28 = vpop.permute.xlu0 %79   ;;  %v86_v29 = vpop.permute.xlu1 %85  }
  0x8d   :  { %82 = vst.msk [vmem:[#allocation0] sm:$0x1] %vm81_vm13, %v80_v28  }
  0x8e   :  { %88 = vst.msk [vmem:[#allocation0] sm:$0x1] %vm87_vm14, %v86_v29  }
  0x90   :  { %v92_v30 = vpop.permute.xlu0 %91  }
  0x91   :  { %94 = vst.msk [vmem:[#allocation0] sm:$0x1] %vm93_vm15, %v92_v30  }
  0x98   :  { %v98_v31 = vld [vmem:[#allocation0] sm:$0x1] }
  0x99   :  { %100 = vst [vmem:[%s208_s1] sm:$0x1] %v98_v31 }

// kernel: tile.33
= control target key start
LH: loop header
LB: loop body
LE: loop exit
PB: predicated region body
PF: predicated region fallthrough
CT: control target
= control target key end

     0   :  { %2 = vsyncpa [#allocation1], 0  ;;  %s47_s6 = smov [#allocation0]   ;;  %s76_s0 = inlined_call_operand.hbm [shape: f32[8], index: 0, kind: input, shape index: {}]   ;;  %s77_s1 = inlined_call_operand.vmem [shape: f32[16,8], index: 1, kind: output, shape index: {}]  }
   0x1   :  { %s9_s7 = sshll.u32 %s47_s6, 4  ;;  %s23_s10 = scalar_lea.hbm %s76_s0, 16  ;;  %s10_s7 = int_to_ptr.vmem [resolvable:$true] %s9_s7 }
   0x2   :  { %p24_p0 = scmp.ne.s32.totalorder %s76_s0, %s23_s10  ;;  %p27_p1 = scmp.lt.u32.totalorder %s23_s10, %s76_s0 }
   0x4   :  { %p29_p2 = pnand %p27_p1, %p24_p0 }
   0x6   :  { %32 = shalt.err (!%p29_p2)
}
   0x7   :  { %s33_s15 = scalar_lea.vmem %s10_s7, 16  ;;  %s37_s16 = scalar_lea.vmem %s10_s7, 32 }
   0x8   :  { %p34_p3 = scmp.ne.s32.totalorder %s10_s7, %s33_s15  ;;  %p38_p4 = scmp.lt.s32.totalorder %s10_s7, %s10_s7 }
   0x9   :  { %p39_p5 = scmp.lt.s32.totalorder %s37_s16, %s33_s15 }
   0xb   :  { %p40_p6 = por %p39_p5, %p38_p4 }
   0xd   :  { %p41_p7 = pnand %p40_p6, %p34_p3 }
   0xf   :  { %44 = shalt.err (!%p41_p7)
}
  0x10   :  { %12 = dma.hbm_to_vmem [thread:$0]  %s76_s0, 16, %s10_s7, [#allocation1]  }
  0x11   :  { %45 = dma.done.wait [#allocation1], 16  }
  0x12   :  { %46 = vsyncadd [#allocation1], 4294967280  ;;  %v16_v0 = vld [vmem:[#allocation0] ss:$0 sm:$0xff] }
  0x13   :  { %17 = vst [vmem:[%s77_s1] sm:$0xff] %v16_v0  ;;  %21 = vst [vmem:[%s77_s1 + $0x8] sm:$0xff] %v16_v0 }
  0x14   :  { %20 = vsyncpa [#allocation1], 1 }

// kernel: tile.34
= control target key start
LH: loop header
LB: loop body
LE: loop exit
PB: predicated region body
PF: predicated region fallthrough
CT: control target
= control target key end

     0   :  { %s131_s10 = smov 120   ;;  %s132_s11 = smov 104   ;;  %vm3_vm0 = vcmask 64512   ;;  %vm9_vm1 = vcmask 1048512   ;;  %vm15_vm2 = vcmask 982912   ;;  %vm21_vm3 = vcmask 917312   ;;  %s207_s0 = inlined_call_operand.vmem [shape: f32[16,8], index: 0, kind: input, shape index: {}]   ;;  %s208_s1 = inlined_call_operand.vmem [shape: f32[1,128], index: 1, kind: output, shape index: {}]  }
   0x1   :  { %v101_v0 = vld [vmem:[%s207_s0 + $0xf] sm:$0x1]   ;;  %v103_v1 = vld [vmem:[%s207_s0 + $0xd] sm:$0x1]   ;;  %v102_v2 = vld [vmem:[%s207_s0 + $0xe] sm:$0x1]  }
   0x2   :  { %7 = vrot.lane.b32.xlu0 %v101_v0, %s131_s10  ;;  %19 = vrot.lane.b32.xlu1 %v103_v1, %s132_s11  ;;  %v104_v3 = vld [vmem:[%s207_s0 + $0xc] sm:$0x1]   ;;  %s133_s16 = smov 112   ;;  %s134_s17 = smov 96   ;;  %v105_v4 = vld [vmem:[%s207_s0 + $0xb] sm:$0x1]  }
   0x3   :  { %v106_v5 = vld [vmem:[%s207_s0 + $0xa] sm:$0x1]   ;;  %v2_v6 = vld [vmem:[%s207_s0] sm:$0x1]   ;;  %s135_s24 = smov 88   ;;  %s136_s25 = smov 80  }
   0x4   :  { %4 = vst.msk [vmem:[#allocation0] sm:$0x1] %vm3_vm0, %v2_v6   ;;  %v107_v7 = vld [vmem:[%s207_s0 + $0x9] sm:$0x1]   ;;  %v108_v8 = vld [vmem:[%s207_s0 + $0x8] sm:$0x1]  }
   0x5   :  { %s137_s30 = smov 72   ;;  %s138_s2 = smov 64   ;;  %v109_v9 = vld [vmem:[%s207_s0 + $0x7] sm:$0x1]   ;;  %v110_v10 = vld [vmem:[%s207_s0 + $0x6] sm:$0x1]  }
   0x6   :  { %13 = vrot.lane.b32.xlu0 %v102_v2, %s133_s16  ;;  %25 = vrot.lane.b32.xlu1 %v104_v3, %s134_s17  ;;  %s139_s7 = smov 56   ;;  %s140_s8 = smov 48   ;;  %v111_v11 = vld [vmem:[%s207_s0 + $0x5] sm:$0x1]   ;;  %v112_v12 = vld [vmem:[%s207_s0 + $0x4] sm:$0x1]  }
   0x7   :  { %s141_s13 = smov 40   ;;  %s142_s14 = smov 32   ;;  %v113_v13 = vld [vmem:[%s207_s0 + $0x3] sm:$0x1]   ;;  %v114_v14 = vld [vmem:[%s207_s0 + $0x2] sm:$0x1]  }
   0x8   :  { %s143_s19 = smov 24   ;;  %s144_s20 = smov 16   ;;  %v115_v15 = vld [vmem:[%s207_s0 + $0x1] sm:$0x1]   ;;  %vm27_vm4 = vcmask 851712   ;;  %vm33_vm5 = vcmask 786112  }
   0x9   :  { %s145_s0 = smov 8   ;;  %vm39_vm6 = vcmask 720512   ;;  %vm45_vm7 = vcmask 654912   ;;  %vm51_vm8 = vcmask 589312   ;;  %vm57_vm9 = vcmask 523712  }
   0xa   :  { %31 = vrot.lane.b32.xlu0 %v105_v4, %s135_s24  ;;  %37 = vrot.lane.b32.xlu1 %v106_v5, %s136_s25  ;;  %vm63_vm10 = vcmask 458112   ;;  %vm69_vm11 = vcmask 392512   ;;  %vm75_vm12 = vcmask 326912   ;;  %vm81_vm13 = vcmask 261312  }
   0xb   :  { %vm87_vm14 = vcmask 195712   ;;  %vm93_vm15 = vcmask 130112  }
   0xe   :  { %43 = vrot.lane.b32.xlu0 %v107_v7, %s137_s30  ;;  %49 = vrot.lane.b32.xlu1 %v108_v8, %s138_s2 }
  0x12   :  { %55 = vrot.lane.b32.xlu0 %v109_v9, %s139_s7  ;;  %61 = vrot.lane.b32.xlu1 %v110_v10, %s140_s8 }
  0x16   :  { %67 = vrot.lane.b32.xlu0 %v111_v11, %s141_s13  ;;  %73 = vrot.lane.b32.xlu1 %v112_v12, %s142_s14 }
  0x1a   :  { %79 = vrot.lane.b32.xlu0 %v113_v13, %s143_s19  ;;  %85 = vrot.lane.b32.xlu1 %v114_v14, %s144_s20 }
  0x1e   :  { %91 = vrot.lane.b32.xlu0 %v115_v15, %s145_s0 }
  0x74   :  { %v8_v16 = vpop.permute.xlu0 %7   ;;  %v20_v17 = vpop.permute.xlu1 %19  }
  0x75   :  { %10 = vst.msk [vmem:[#allocation0] sm:$0x1] %vm9_vm1, %v8_v16  }
  0x78   :  { %v14_v18 = vpop.permute.xlu0 %13   ;;  %v26_v19 = vpop.permute.xlu1 %25  }
  0x79   :  { %16 = vst.msk [vmem:[#allocation0] sm:$0x1] %vm15_vm2, %v14_v18  }
  0x7a   :  { %22 = vst.msk [vmem:[#allocation0] sm:$0x1] %vm21_vm3, %v20_v17  }
  0x7b   :  { %28 = vst.msk [vmem:[#allocation0] sm:$0x1] %vm27_vm4, %v26_v19  }
  0x7c   :  { %v32_v20 = vpop.permute.xlu0 %31   ;;  %v38_v21 = vpop.permute.xlu1 %37  }
  0x7d   :  { %34 = vst.msk [vmem:[#allocation0] sm:$0x1] %vm33_vm5, %v32_v20  }
  0x7e   :  { %40 = vst.msk [vmem:[#allocation0] sm:$0x1] %vm39_vm6, %v38_v21  }
  0x80   :  { %v44_v22 = vpop.permute.xlu0 %43   ;;  %v50_v23 = vpop.permute.xlu1 %49  }
  0x81   :  { %46 = vst.msk [vmem:[#allocation0] sm:$0x1] %vm45_vm7, %v44_v22  }
  0x82   :  { %52 = vst.msk [vmem:[#allocation0] sm:$0x1] %vm51_vm8, %v50_v23  }
  0x84   :  { %v56_v24 = vpop.permute.xlu0 %55   ;;  %v62_v25 = vpop.permute.xlu1 %61  }
  0x85   :  { %58 = vst.msk [vmem:[#allocation0] sm:$0x1] %vm57_vm9, %v56_v24  }
  0x86   :  { %64 = vst.msk [vmem:[#allocation0] sm:$0x1] %vm63_vm10, %v62_v25  }
  0x88   :  { %v68_v26 = vpop.permute.xlu0 %67   ;;  %v74_v27 = vpop.permute.xlu1 %73  }
  0x89   :  { %70 = vst.msk [vmem:[#allocation0] sm:$0x1] %vm69_vm11, %v68_v26  }
  0x8a   :  { %76 = vst.msk [vmem:[#allocation0] sm:$0x1] %vm75_vm12, %v74_v27  }
  0x8c   :  { %v80_v28 = vpop.permute.xlu0 %79   ;;  %v86_v29 = vpop.permute.xlu1 %85  }
  0x8d   :  { %82 = vst.msk [vmem:[#allocation0] sm:$0x1] %vm81_vm13, %v80_v28  }
  0x8e   :  { %88 = vst.msk [vmem:[#allocation0] sm:$0x1] %vm87_vm14, %v86_v29  }
  0x90   :  { %v92_v30 = vpop.permute.xlu0 %91  }
  0x91   :  { %94 = vst.msk [vmem:[#allocation0] sm:$0x1] %vm93_vm15, %v92_v30  }
  0x98   :  { %v98_v31 = vld [vmem:[#allocation0] sm:$0x1] }
  0x99   :  { %100 = vst [vmem:[%s208_s1] sm:$0x1] %v98_v31 }

// kernel: _lambda_.1
= control target key start
LH: loop header
LB: loop body
LE: loop exit
PB: predicated region body
PF: predicated region fallthrough
CT: control target
= control target key end

     0   :  { %vm49_vm0 = vsmask.f32 3328  ;;  %vm50_vm1 = vsmask.f32 7440  ;;  %vm337_vm2 = vcmask 1042432   ;;  %vm338_vm3 = vcmask 1046532   ;;  %s1631_s1 = inlined_call_operand.vmem [shape: bf16[3,128,64], index: 1, kind: input, shape index: {}]   ;;  %s1632_s0 = inlined_call_operand.vmem [shape: bf16[2,18,128], index: 0, kind: input, shape index: {}]   ;;  %s1633_s4 = inlined_call_operand.vmem [shape: bf16[3,64,128], index: 4, kind: input, shape index: {}]   ;;  %s1634_s2 = inlined_call_operand.vmem [shape: f32[1,64], index: 2, kind: input, shape index: {}]   ;;  %s1635_s3 = inlined_call_operand.vmem [shape: f32[1,64], index: 3, kind: input, shape index: {}]   ;;  %s1636_s5 = inlined_call_operand.vmem [shape: f32[1,128], index: 5, kind: input, shape index: {}]   ;;  %s1637_s6 = inlined_call_operand.vmem [shape: f32[1,128], index: 6, kind: input, shape index: {}]   ;;  %s1638_s7 = inlined_call_operand.vmem [shape: f32[2,16,128], index: 7, kind: output, shape index: {}]  }
   0x1   :  { %v1270_v0 = vld [vmem:[%s1631_s1] sm:$0xff]   ;;  %v1271_v1 = vld [vmem:[%s1631_s1 + $0x8] sm:$0xff]   ;;  %v1272_v2 = vld [vmem:[%s1631_s1 + $0x10] sm:$0xff]   ;;  %vm506_vm6 = vcmask 516096   ;;  %vm507_vm7 = vsmask.f32 256 }
   0x2   :  { %1178 = vmatprep.subr.bf16.mxu0 %v1270_v0  ;;  %v1273_v3 = vld [vmem:[%s1631_s1 + $0x18] sm:$0xff]   ;;  %v1278_v4 = vld [vmem:[%s1631_s1 + $0x40] sm:$0xff]   ;;  %v1281_v10 = vld [vmem:[%s1631_s1 + $0x48] sm:$0xff]   ;;  %vm515_vm9 = vsmask.f32 7938  ;;  %vm577_vm11 = vcmask 519168  }
   0x3   :  { %1179 = vmatpush3.bf16.msra.mxu0 %v1270_v0  ;;  %v27_v5 = vld [vmem:[%s1632_s0] sm:$0xf]  ;;  %v1371_v6 = vld [vmem:[%s1632_s0 + $0x4] sm:$0xf]  ;;  %1158 = vmatprep.subr.bf16.mxu1 %v1278_v4  ;;  %v1284_v15 = vld [vmem:[%s1631_s1 + $0x50] sm:$0xff]   ;;  %vm695_vm15 = vcmask 523264  }
   0x4   :  { %1180 = vmatprep.subr.bf16.mxu0 %v1271_v1  ;;  %v53_v7 = vshrl.u32 %v27_v5, 16  ;;  %v56_v8 = vshll.u32 %v27_v5, 16  ;;  %v1018_v9 = vcombine.low %v27_v5, %v1371_v6  ;;  %1159 = vmatpush3.bf16.msra.mxu1 %v1278_v4  ;;  %v1274_v11 = vld [vmem:[%s1631_s1 + $0x20] sm:$0xff]   ;;  %v66_v13 = vshrl.u32 %v1371_v6, 16  ;;  %v1387_v16 = vld [vmem:[%s1632_s0 + $0xc] sm:$0xf]  ;;  %vm1423_vm4 = vmor %vm49_vm0, %vm50_vm1 }
   0x5   :  { %1160 = vmatprep.subr.bf16.mxu1 %v1281_v10  ;;  %v1275_v17 = vld [vmem:[%s1631_s1 + $0x28] sm:$0xff]   ;;  %v1395_v18 = vld [vmem:[%s1632_s0 + $0x10] sm:$0xf]  ;;  %v77_v19 = vshrl.u32 %v1387_v16, 16  ;;  %v1286_v20 = vld [vmem:[%s1631_s1 + $0x58] sm:$0xff]   ;;  %v62_v21 = vshll.u32 %v1371_v6, 16 }
   0x6   :  { %1194 = vmatprep.mubr.bf16.mxu0 %v1018_v9  ;;  %v55_v12 = vrot.slane %v53_v7, 4  ;;  %v58_v14 = vrot.slane %v56_v8, 5  ;;  %v1276_v22 = vld [vmem:[%s1631_s1 + $0x30] sm:$0xff]   ;;  %v80_v23 = vshll.u32 %v1387_v16, 16  ;;  %v68_v24 = vrot.slane %v66_v13, 4  ;;  %v1288_v28 = vld [vmem:[%s1631_s1 + $0x60] sm:$0xff]   ;;  %vm1437_vm5 = vmor %vm337_vm2, %vm338_vm3 }
   0x7   :  { %1181 = vmatpush3.bf16.msra.mxu0 %v1271_v1  ;;  %v90_v25 = vshrl.u32 %v1395_v18, 16  ;;  %v64_v27 = vrot.slane %v62_v21, 5  ;;  %v342_v29 = vrot.slane %v1371_v6, 5  ;;  %v86_v31 = vshll.u32 %v1395_v18, 16  ;;  %v1277_v32 = vld [vmem:[%s1631_s1 + $0x38] sm:$0xff]   ;;  %v1290_v37 = vld [vmem:[%s1631_s1 + $0x68] sm:$0xff]   ;;  %vm1496_vm8 = vmand %vm506_vm6, %vm507_vm7 }
   0x8   :  { %1182 = vmatprep.subr.bf16.mxu0 %v1272_v2  ;;  %1161 = vmatpush3.bf16.msra.mxu1 %v1281_v10  ;;  %v59_v26 = vor.u32 %v58_v14, %v55_v12  ;;  %v79_v33 = vrot.slane %v77_v19, 4  ;;  %v82_v34 = vrot.slane %v80_v23, 5  ;;  %v47_v39 = vld [vmem:[%s1632_s0 + $0x8] sm:$0x1]  ;;  %v1430_v46 = vld [vmem:[%s1632_s0 + $0x14] sm:$0x1]  ;;  %v1019_v56 = vcombine.low %v1387_v16, %v1395_v18  ;;  %vm516_vm10 = vmand %vm506_vm6, %vm515_vm9 }
   0x9   :  { %1162 = vmatprep.subr.bf16.mxu1 %v1284_v15  ;;  %v69_v30 = vor.u32 %v68_v24, %v64_v27  ;;  %v92_v36 = vrot.slane %v90_v25, 4  ;;  %v88_v38 = vrot.slane %v86_v31, 5  ;;  %v344_v42 = vrot.slane %v342_v29, 4  ;;  %v331_v48 = vld [vmem:[%s1632_s0] sm:$0xe]  ;;  %v1292_v51 = vld [vmem:[%s1631_s1 + $0x70] sm:$0xff]   ;;  %vm1531_vm13 = vmand %vm577_vm11, %vm515_vm9 }
   0xa   :  { %v60_v35 = vrot.slane %v59_v26, 4  ;;  %v72_v43 = vshll.u32 %v47_v39, 16  ;;  %v345_v44 = vrot.slane %v47_v39, 5  ;;  %v83_v45 = vor.u32 %v82_v34, %v79_v33  ;;  %v1280_v50 = vld [vmem:[%s1631_s1 + $0x80] sm:$0xff]   ;;  %v1283_v0 = vld [vmem:[%s1631_s1 + $0x88] sm:$0xff]   ;;  %v1294_v1 = vld [vmem:[%s1631_s1 + $0x78] sm:$0xff]  }
   0xb   :  { %1183 = vmatpush3.bf16.msra.mxu0 %v1272_v2  ;;  %v70_v41 = vrot.slane %v69_v30, 4  ;;  %v93_v47 = vor.u32 %v92_v36, %v88_v38  ;;  %v96_v54 = vshll.u32 %v1430_v46, 16  ;;  %v1028_v55 = vrot.slane %v331_v48, 9  ;;  %v1285_v5 = vld [vmem:[%s1631_s1 + $0x90] sm:$0xff]   ;;  %v1287_v7 = vld [vmem:[%s1631_s1 + $0x98] sm:$0xff]   ;;  %v1289_v8 = vld [vmem:[%s1631_s1 + $0xa0] sm:$0xff]  }
   0xc   :  { %1184 = vmatprep.subr.bf16.mxu0 %v1273_v3  ;;  %1163 = vmatpush3.bf16.msra.mxu1 %v1284_v15  ;;  %v65_v52 = vsel %vm1423_vm4, %v60_v35, %v64_v27  ;;  %v74_v53 = vrot.slane %v72_v43, 5  ;;  %v84_v58 = vrot.slane %v83_v45, 4  ;;  %v346_v59 = vsel %vm1437_vm5, %v344_v42, %v345_v44  ;;  %v1291_v9 = vld [vmem:[%s1631_s1 + $0xa8] sm:$0xff]   ;;  %v1295_v16 = vld [vmem:[%s1631_s1 + $0xb8] sm:$0xff]   ;;  %v520_v24 = vld [vmem:[#allocation2 + $0x14] sm:$0x1] }
   0xd   :  { %1164 = vmatprep.subr.bf16.mxu1 %v1286_v20  ;;  %v94_v61 = vrot.slane %v93_v47, 4  ;;  %v98_v62 = vrot.slane %v96_v54, 5  ;;  %v343_v63 = vsel %vm1437_vm5, %v1028_v55, %v342_v29  ;;  %v349_v10 = vrot.slane %v1395_v18, 5  ;;  %v332_v12 = vld [vmem:[%s1632_s0 + $0xc] sm:$0xe]  ;;  %v1296_v29 = vld [vmem:[%s1633_s4 + $0x20] sm:$0xff]  }
   0xe   :  { %v75_v57 = vsel %vm1423_vm4, %v70_v41, %v74_v53  ;;  %v1046_v2 = vcombine.low %v343_v63, %v346_v59  ;;  %v352_v13 = vrot.slane %v1430_v46, 5  ;;  %v1029_v14 = vrot.slane %v332_v12, 9  ;;  %v512_v21 = vld [vmem:[#allocation2 + $0xc] sm:$0x1]  ;;  %v509_v25 = vld [vmem:[#allocation2] sm:$0x1] }
   0xf   :  { %1185 = vmatpush3.bf16.msra.mxu0 %v1273_v3  ;;  %v1008_v60 = vcombine.low %v65_v52, %v75_v57  ;;  %v89_v3 = vsel %vm1423_vm4, %v84_v58, %v88_v38  ;;  %v99_v4 = vsel %vm1423_vm4, %v94_v61, %v98_v62  ;;  %v351_v15 = vrot.slane %v349_v10, 4  ;;  %v1297_v30 = vld [vmem:[%s1633_s4 + $0x28] sm:$0xff]   ;;  %v1298_v31 = vld [vmem:[%s1633_s4 + $0x30] sm:$0xff]   ;;  %v1520_v33 = vld [vmem:[%s1633_s4] sm:$0xff]  }
  0x10   :  { %1186 = vmatprep.subr.bf16.mxu0 %v1274_v11  ;;  %1165 = vmatpush3.bf16.msra.mxu1 %v1286_v20  ;;  %v1009_v6 = vcombine.low %v89_v3, %v99_v4  ;;  %v513_v23 = vsel %vm1496_vm8, 0, %v512_v21  ;;  %v521_v27 = vsel %vm516_vm10, 0, %v520_v24  ;;  %v1056_v39 = vld [vmem:[%s1634_s2] ss:$0 sm:$0xff]  ;;  %vm535_vm12 = vsmask.f32 4368 }
  0x11   :  { %1166 = vmatprep.subr.bf16.mxu1 %v1288_v28  ;;  %1174 = vmatprep.mubr.bf16.mxu1 %v1008_v60  ;;  %v353_v18 = vsel %vm1437_vm5, %v351_v15, %v352_v13  ;;  %514 = vst [vmem:[#allocation2 + $0xc] sm:$0x1] %v513_v23  ;;  %522 = vst [vmem:[#allocation2 + $0x14] sm:$0x1] %v521_v27  ;;  %v1057_v43 = vld [vmem:[%s1635_s3] ss:$0 sm:$0xff] }
  0x12   :  { %vm1536_vm14 = vmor %vm507_vm7, %vm535_vm12  ;;  %v1303_v40 = vld [vmem:[%s1633_s4 + $0x10] sm:$0xff]  }
  0x13   :  { %1187 = vmatpush3.bf16.msra.mxu0 %v1274_v11  ;;  %v1293_v11 = vld [vmem:[%s1631_s1 + $0xb0] sm:$0xff]  }
  0x14   :  { %1188 = vmatprep.subr.bf16.mxu0 %v1275_v17  ;;  %1167 = vmatpush3.bf16.msra.mxu1 %v1288_v28  ;;  %v510_v28 = vsel %vm1496_vm8, 0, %v509_v25 }
  0x15   :  { %1168 = vmatprep.subr.bf16.mxu1 %v1290_v37  ;;  %511 = vst [vmem:[#allocation2] sm:$0x1] %v510_v28 }
  0x17   :  { %1189 = vmatpush3.bf16.msra.mxu0 %v1275_v17  ;;  %v350_v17 = vsel %vm1437_vm5, %v1029_v14, %v349_v10 }
  0x18   :  { %1190 = vmatprep.subr.bf16.mxu0 %v1276_v22  ;;  %1169 = vmatpush3.bf16.msra.mxu1 %v1290_v37  ;;  %v1047_v19 = vcombine.low %v350_v17, %v353_v18  ;;  %v591_v18 = vld [vmem:[#allocation2 + $0x14] sm:$0x1] }
  0x19   :  { %1170 = vmatprep.subr.bf16.mxu1 %v1292_v51 }
  0x1b   :  { %1191 = vmatpush3.bf16.msra.mxu0 %v1276_v22  ;;  %v517_v22 = vld [vmem:[#allocation2 + $0x8] sm:$0x1] }
  0x1c   :  { %1192 = vmatprep.subr.bf16.mxu0 %v1277_v32  ;;  %1171 = vmatpush3.bf16.msra.mxu1 %v1292_v51  ;;  %v518_v26 = vsel %vm516_vm10, 0, %v517_v22  ;;  %v579_v13 = vld [vmem:[#allocation2] sm:$0xf] }
  0x1d   :  { %1172 = vmatprep.subr.bf16.mxu1 %v1294_v1  ;;  %519 = vst [vmem:[#allocation2 + $0x8] sm:$0x1] %v518_v26 }
  0x1f   :  { %1193 = vmatpush3.bf16.msra.mxu0 %v1277_v32  ;;  %v1299_v32 = vld [vmem:[%s1633_s4 + $0x38] sm:$0xff]  }
  0x20   :  { %1198 = vmatprep.subr.bf16.mxu0 %v1280_v50  ;;  %1173 = vmatpush3.bf16.msra.mxu1 %v1294_v1 }
  0x21   :  { %1218 = vmatprep.subr.bf16.mxu1 %v1296_v29 }
  0x22   :  { %1195 = vmatmul.mubr.bf16.vlgmr.msra.gmra.mrb[0].mxu0 %v1019_v56 }
  0x23   :  { %1199 = vmatpush3.bf16.msra.mxu0 %v1280_v50  ;;  %1214 = vmatprep.mubr.bf16.mxu0 %v1046_v2 }
  0x24   :  { %1200 = vmatprep.subr.bf16.mxu0 %v1283_v0  ;;  %1175 = vmatmul.mubr.bf16.vlgmr.msra.gmra.mrb[0].mxu1 %v1009_v6  ;;  %v584_v26 = vld [vmem:[#allocation2 + $0x8] sm:$0x1] }
  0x25   :  { %1219 = vmatpush3.bf16.msra.mxu1 %v1296_v29 }
  0x26   :  { %1220 = vmatprep.subr.bf16.mxu1 %v1297_v30 }
  0x27   :  { %1201 = vmatpush3.bf16.msra.mxu0 %v1283_v0 }
  0x28   :  { %1202 = vmatprep.subr.bf16.mxu0 %v1285_v5 }
  0x29   :  { %1221 = vmatpush3.bf16.msra.mxu1 %v1297_v30 }
  0x2a   :  { %1222 = vmatprep.subr.bf16.mxu1 %v1298_v31 }
  0x2b   :  { %1203 = vmatpush3.bf16.msra.mxu0 %v1285_v5 }
  0x2c   :  { %1204 = vmatprep.subr.bf16.mxu0 %v1287_v7 }
  0x2d   :  { %1223 = vmatpush3.bf16.msra.mxu1 %v1298_v31 }
  0x2e   :  { %1224 = vmatprep.subr.bf16.mxu1 %v1299_v32 }
  0x2f   :  { %1205 = vmatpush3.bf16.msra.mxu0 %v1287_v7 }
  0x30   :  { %1206 = vmatprep.subr.bf16.mxu0 %v1289_v8 }
  0x31   :  { %1225 = vmatpush3.bf16.msra.mxu1 %v1299_v32 }
  0x32   :  { %1230 = vmatprep.subr.bf16.mxu1 %v1520_v33 }
  0x33   :  { %1207 = vmatpush3.bf16.msra.mxu0 %v1289_v8  ;;  %v587_v8 = vld [vmem:[#allocation2 + $0xc] sm:$0xf] }
  0x34   :  { %1208 = vmatprep.subr.bf16.mxu0 %v1291_v9 }
  0x37   :  { %1209 = vmatpush3.bf16.msra.mxu0 %v1291_v9 }
  0x38   :  { %1210 = vmatprep.subr.bf16.mxu0 %v1293_v11 }
  0x3b   :  { %1211 = vmatpush3.bf16.msra.mxu0 %v1293_v11 }
  0x3c   :  { %1212 = vmatprep.subr.bf16.mxu0 %v1295_v16 }
  0x3f   :  { %1213 = vmatpush3.bf16.msra.mxu0 %v1295_v16 }
  0x42   :  { %1215 = vmatmul.mubr.bf16.vlgmr.msra.gmra.mrb[0].mxu0 %v1047_v19 }
  0xf7   :  { %v1176_v34 = vpop.f32.mrb[0].mxu1 }
  0xf8   :  { %v207_v35 = vpop.f32.mrb[1].mxu1 }
  0xf9   :  { %v1177_v36 = vpop.f32.mrb[2].mxu1 }
  0xfa   :  { %v210_v37 = vpop.f32.mrb[3].mxu1 }
 0x115   :  { %v1216_v38 = vpop.f32.mrb[0].mxu0 }
 0x116   :  { %v1254_v41 = vadd.f32 %v1216_v38, %v1176_v34  ;;  %v461_v42 = vpop.f32.mrb[1].mxu0 }
 0x117   :  { %v1255_v44 = vadd.f32 %v461_v42, %v207_v35  ;;  %v1217_v45 = vpop.f32.mrb[2].mxu0 }
 0x118   :  { %v489_v46 = vmul.f32 %v1254_v41, %v1056_v39  ;;  %v1256_v47 = vadd.f32 %v1217_v45, %v1177_v36  ;;  %v464_v48 = vpop.f32.mrb[3].mxu0 }
 0x119   :  { %v487_v50 = vmul.f32 %v1255_v44, %v1056_v39  ;;  %v1257_v51 = vadd.f32 %v464_v48, %v210_v37 }
 0x11a   :  { %v500_v52 = vadd.f32 %v1057_v43, %v489_v46  ;;  %v490_v53 = vmul.f32 %v1256_v47, %v1056_v39 }
 0x11b   :  { %v498_v54 = vadd.f32 %v1057_v43, %v487_v50  ;;  %v488_v55 = vmul.f32 %v1257_v51, %v1056_v39 }
 0x11c   :  { %v504_v56 = vmax.f32 %v500_v52, 0.0  ;;  %v501_v57 = vadd.f32 %v1057_v43, %v490_v53 }
 0x11d   :  { %v502_v58 = vmax.f32 %v498_v54, 0.0  ;;  %v499_v59 = vadd.f32 %v1057_v43, %v488_v55 }
 0x11e   :  { %v1108_v60 = vpack.c.bf16 %v504_v56, %v504_v56  ;;  %v505_v61 = vmax.f32 %v501_v57, 0.0 }
 0x11f   :  { %v1106_v62 = vpack.c.bf16 %v502_v58, %v502_v58  ;;  %v503_v63 = vmax.f32 %v499_v59, 0.0 }
 0x120   :  { %v555_v0 = vshrl.u32 %v1108_v60, 16  ;;  %v1109_v1 = vpack.c.bf16 %v505_v61, %v505_v61  ;;  %v558_v5 = vshll.u32 %v1108_v60, 16 }
 0x121   :  { %v538_v2 = vshrl.u32 %v1106_v62, 16  ;;  %v1107_v3 = vpack.c.bf16 %v503_v63, %v503_v63  ;;  %v541_v10 = vshll.u32 %v1106_v62, 16 }
 0x122   :  { %v557_v4 = vrot.slane %v555_v0, 7  ;;  %v563_v6 = vshrl.u32 %v1109_v1, 16  ;;  %v566_v15 = vshll.u32 %v1109_v1, 16 }
 0x123   :  { %v540_v9 = vrot.slane %v538_v2, 7  ;;  %v546_v11 = vshrl.u32 %v1107_v3, 16  ;;  %v549_v21 = vshll.u32 %v1107_v3, 16 }
 0x124   :  { %v560_v12 = vor.u32 %v558_v5, %v557_v4  ;;  %v565_v14 = vrot.slane %v563_v6, 7  ;;  %v561_v22 = vrot.slane %v557_v4, 4 }
 0x125   :  { %v543_v16 = vor.u32 %v541_v10, %v540_v9  ;;  %v548_v19 = vrot.slane %v546_v11, 7  ;;  %v544_v27 = vrot.slane %v540_v9, 4 }
 0x126   :  { %v588_v23 = vsel %vm1531_vm13, %v560_v12, %v587_v8  ;;  %v568_v24 = vor.u32 %v566_v15, %v565_v14  ;;  %v570_v25 = vrot.slane %v565_v14, 4 }
 0x127   :  { %589 = vst [vmem:[#allocation2 + $0xc] sm:$0xf] %v588_v23  ;;  %v580_v28 = vsel %vm1531_vm13, %v543_v16, %v579_v13  ;;  %v551_v29 = vor.u32 %v549_v21, %v548_v19  ;;  %v553_v30 = vrot.slane %v548_v19, 4  ;;  %v1302_v13 = vld [vmem:[%s1633_s4 + $0x8] sm:$0xff]   ;;  %v1304_v16 = vld [vmem:[%s1633_s4 + $0x18] sm:$0xff]  }
 0x128   :  { %581 = vst [vmem:[#allocation2] sm:$0xf] %v580_v28  ;;  %v569_v31 = vsel %vm1536_vm14, %v561_v22, %v568_v24  ;;  %v592_v32 = vsel %vm1496_vm8, %v570_v25, %v591_v18  ;;  %v1307_v25 = vld [vmem:[%s1633_s4 + $0x48] sm:$0xff]  }
 0x129   :  { %590 = vst.msk [vmem:[#allocation2 + $0x10] sm:$0xf] %vm577_vm11, %v569_v31  ;;  %593 = vst [vmem:[#allocation2 + $0x14] sm:$0x1] %v592_v32  ;;  %v552_v34 = vsel %vm1536_vm14, %v544_v27, %v551_v29  ;;  %v585_v35 = vsel %vm1496_vm8, %v553_v30, %v584_v26  ;;  %v1308_v27 = vld [vmem:[%s1633_s4 + $0x50] sm:$0xff]   ;;  %v1309_v29 = vld [vmem:[%s1633_s4 + $0x58] sm:$0xff]  }
 0x12a   :  { %583 = vst.msk [vmem:[#allocation2 + $0x4] sm:$0xf] %vm577_vm11, %v552_v34  ;;  %586 = vst [vmem:[#allocation2 + $0x8] sm:$0x1] %v585_v35 }
 0x12e   :  { %v1554_v36 = vld [vmem:[#allocation2 + $0xc] sm:$0xf] }
 0x12f   :  { %v594_v37 = vld [vmem:[#allocation2] sm:$0xf]  ;;  %v633_v38 = vshrl.u32 %v1554_v36, 16  ;;  %v636_v39 = vshll.u32 %v1554_v36, 16  ;;  %v841_v31 = vld [vmem:[#allocation2 + $0xc] sm:$0xe] }
 0x130   :  { %v609_v41 = vshrl.u32 %v594_v37, 16  ;;  %v612_v42 = vshll.u32 %v594_v37, 16  ;;  %v1558_v43 = vld [vmem:[#allocation2 + $0x10] sm:$0xf]  ;;  %v1560_v52 = vld [vmem:[#allocation2 + $0x14] sm:$0x1] }
 0x131   :  { %v595_v44 = vld [vmem:[#allocation2 + $0x4] sm:$0xf]  ;;  %v606_v45 = vld [vmem:[#allocation2 + $0x8] sm:$0x1]  ;;  %v635_v46 = vrot.slane %v633_v38, 4  ;;  %v638_v47 = vrot.slane %v636_v39, 5  ;;  %v1079_v23 = vcombine.low %v1554_v36, %v1558_v43 }
 0x132   :  { %v611_v20 = vrot.slane %v609_v41, 4  ;;  %v614_v48 = vrot.slane %v612_v42, 5  ;;  %v618_v50 = vshll.u32 %v595_v44, 16  ;;  %v622_v51 = vshrl.u32 %v595_v44, 16  ;;  %v840_v18 = vld [vmem:[#allocation2] sm:$0xe] }
 0x133   :  { %v639_v53 = vor.u32 %v638_v47, %v635_v46  ;;  %v642_v54 = vshll.u32 %v1558_v43, 16  ;;  %v646_v55 = vshrl.u32 %v1558_v43, 16  ;;  %v628_v59 = vshll.u32 %v606_v45, 16  ;;  %v1104_v38 = vld [vmem:[%s1636_s5] ss:$0 sm:$0xff] }
 0x134   :  { %v615_v56 = vor.u32 %v614_v48, %v611_v20  ;;  %v620_v57 = vrot.slane %v618_v50, 5  ;;  %v624_v58 = vrot.slane %v622_v51, 4  ;;  %v652_v62 = vshll.u32 %v1560_v52, 16  ;;  %v1105_v41 = vld [vmem:[%s1637_s6] ss:$0 sm:$0xff] }
 0x135   :  { %v644_v60 = vrot.slane %v642_v54, 5  ;;  %v648_v61 = vrot.slane %v646_v55, 4  ;;  %v640_v1 = vrot.slane %v639_v53, 4  ;;  %v630_v4 = vrot.slane %v628_v59, 5 }
 0x136   :  { %v616_v63 = vrot.slane %v615_v56, 4  ;;  %v625_v0 = vor.u32 %v624_v58, %v620_v57  ;;  %v654_v6 = vrot.slane %v652_v62, 5  ;;  %v1078_v14 = vcombine.low %v594_v37, %v595_v44 }
 0x137   :  { %v649_v2 = vor.u32 %v648_v61, %v644_v60  ;;  %v645_v10 = vsel %vm1423_vm4, %v640_v1, %v644_v60  ;;  %v848_v15 = vrot.slane %v595_v44, 5  ;;  %v851_v19 = vrot.slane %v606_v45, 5 }
 0x138   :  { %v626_v3 = vrot.slane %v625_v0, 4  ;;  %v621_v7 = vsel %vm1423_vm4, %v616_v63, %v620_v57  ;;  %v1086_v21 = vrot.slane %v840_v18, 9  ;;  %v855_v28 = vrot.slane %v1558_v43, 5 }
 0x139   :  { %v650_v5 = vrot.slane %v649_v2, 4  ;;  %v850_v17 = vrot.slane %v848_v15, 4  ;;  %v858_v32 = vrot.slane %v1560_v52, 5  ;;  %v1087_v34 = vrot.slane %v841_v31, 9 }
 0x13a   :  { %v631_v8 = vsel %vm1423_vm4, %v626_v3, %v630_v4  ;;  %v849_v24 = vsel %vm1437_vm5, %v1086_v21, %v848_v15  ;;  %v857_v30 = vrot.slane %v855_v28, 4 }
 0x13b   :  { %v1070_v9 = vcombine.low %v621_v7, %v631_v8  ;;  %v655_v11 = vsel %vm1423_vm4, %v650_v5, %v654_v6  ;;  %v852_v22 = vsel %vm1437_vm5, %v850_v17, %v851_v19  ;;  %v856_v36 = vsel %vm1437_vm5, %v1087_v34, %v855_v28 }
 0x13c   :  { %v1071_v12 = vcombine.low %v645_v10, %v655_v11  ;;  %v1096_v26 = vcombine.low %v849_v24, %v852_v22  ;;  %v859_v35 = vsel %vm1437_vm5, %v857_v30, %v858_v32 }
 0x13d   :  { %1226 = vmatprep.mubr.msk.bf16.mxu1 %vm695_vm15, %v1070_v9  ;;  %v1097_v37 = vcombine.low %v856_v36, %v859_v35 }
 0x13e   :  { %1227 = vmatmul.mubr.msk.bf16.vlgmr.msra.gmra.mrb[4].mxu1 %vm695_vm15, %v1071_v12 }
 0x13f   :  { %1231 = vmatpush3.bf16.msra.mxu1 %v1520_v33  ;;  %1238 = vmatprep.mubr.msk.bf16.mxu1 %vm695_vm15, %v1078_v14  ;;  %v1306_v33 = vld [vmem:[%s1633_s4 + $0x40] sm:$0xff]  }
 0x140   :  { %1232 = vmatprep.subr.bf16.mxu1 %v1302_v13 }
 0x143   :  { %1233 = vmatpush3.bf16.msra.mxu1 %v1302_v13 }
 0x144   :  { %1234 = vmatprep.subr.bf16.mxu1 %v1303_v40 }
 0x147   :  { %1235 = vmatpush3.bf16.msra.mxu1 %v1303_v40 }
 0x148   :  { %1236 = vmatprep.subr.bf16.mxu1 %v1304_v16 }
 0x14b   :  { %1237 = vmatpush3.bf16.msra.mxu1 %v1304_v16 }
 0x14c   :  { %1242 = vmatprep.subr.bf16.mxu1 %v1306_v33 }
 0x14e   :  { %1239 = vmatmul.mubr.msk.bf16.vlgmr.msra.gmra.mrb[4].mxu1 %vm695_vm15, %v1079_v23 }
 0x14f   :  { %1243 = vmatpush3.bf16.msra.mxu1 %v1306_v33  ;;  %1250 = vmatprep.mubr.msk.bf16.mxu1 %vm695_vm15, %v1096_v26 }
 0x150   :  { %1244 = vmatprep.subr.bf16.mxu1 %v1307_v25 }
 0x153   :  { %1245 = vmatpush3.bf16.msra.mxu1 %v1307_v25 }
 0x154   :  { %1246 = vmatprep.subr.bf16.mxu1 %v1308_v27 }
 0x157   :  { %1247 = vmatpush3.bf16.msra.mxu1 %v1308_v27 }
 0x158   :  { %1248 = vmatprep.subr.bf16.mxu1 %v1309_v29 }
 0x15b   :  { %1249 = vmatpush3.bf16.msra.mxu1 %v1309_v29 }
 0x15e   :  { %1251 = vmatmul.mubr.msk.bf16.vlgmr.msra.gmra.mrb[4].mxu1 %vm695_vm15, %v1097_v37 }
 0x231   :  { %v1252_v39 = vpop.f32.mrb[4].mxu1 }
 0x232   :  { %v967_v42 = vmul.f32 %v1252_v39, %v1104_v38  ;;  %v939_v43 = vpop.f32.mrb[5].mxu1 }
 0x233   :  { %v965_v44 = vmul.f32 %v1104_v38, %v939_v43  ;;  %v1253_v45 = vpop.f32.mrb[6].mxu1 }
 0x234   :  { %v978_v46 = vadd.f32 %v1105_v41, %v967_v42  ;;  %v968_v47 = vmul.f32 %v1253_v45, %v1104_v38  ;;  %v942_v49 = vpop.f32.mrb[7].mxu1 }
 0x235   :  { %v976_v20 = vadd.f32 %v1105_v41, %v965_v44  ;;  %v966_v48 = vmul.f32 %v1104_v38, %v942_v49 }
 0x236   :  { %v982_v50 = vmax.f32 %v978_v46, 0.0  ;;  %v979_v51 = vadd.f32 %v1105_v41, %v968_v47 }
 0x237   :  { %v980_v52 = vmax.f32 %v976_v20, 0.0  ;;  %v977_v53 = vadd.f32 %v1105_v41, %v966_v48 }
 0x238   :  { %986 = vst [vmem:[%s1638_s7 + $0x10] sm:$0xff] %v982_v50  ;;  %v983_v54 = vmax.f32 %v979_v51, 0.0 }
 0x239   :  { %984 = vst [vmem:[%s1638_s7] sm:$0xff] %v980_v52  ;;  %v981_v55 = vmax.f32 %v977_v53, 0.0 }
 0x23a   :  { %987 = vst [vmem:[%s1638_s7 + $0x18] sm:$0xff] %v983_v54 }
 0x23b   :  { %985 = vst [vmem:[%s1638_s7 + $0x8] sm:$0xff] %v981_v55 }

// kernel: tile.23
= control target key start
LH: loop header
LB: loop body
LE: loop exit
PB: predicated region body
PF: predicated region fallthrough
CT: control target
= control target key end

     0   :  { %2 = vsyncpa [#allocation1], 0  ;;  %s47_s6 = smov [#allocation0]   ;;  %s76_s0 = inlined_call_operand.hbm [shape: f32[4], index: 0, kind: input, shape index: {}]   ;;  %s77_s1 = inlined_call_operand.vmem [shape: f32[16,4], index: 1, kind: output, shape index: {}]  }
   0x1   :  { %s9_s7 = sshll.u32 %s47_s6, 4  ;;  %s23_s10 = scalar_lea.hbm %s76_s0, 16  ;;  %s10_s7 = int_to_ptr.vmem [resolvable:$true] %s9_s7 }
   0x2   :  { %p24_p0 = scmp.ne.s32.totalorder %s76_s0, %s23_s10  ;;  %p27_p1 = scmp.lt.u32.totalorder %s23_s10, %s76_s0 }
   0x4   :  { %p29_p2 = pnand %p27_p1, %p24_p0 }
   0x6   :  { %32 = shalt.err (!%p29_p2)
}
   0x7   :  { %s33_s15 = scalar_lea.vmem %s10_s7, 16  ;;  %s37_s16 = scalar_lea.vmem %s10_s7, 32 }
   0x8   :  { %p34_p3 = scmp.ne.s32.totalorder %s10_s7, %s33_s15  ;;  %p38_p4 = scmp.lt.s32.totalorder %s10_s7, %s10_s7 }
   0x9   :  { %p39_p5 = scmp.lt.s32.totalorder %s37_s16, %s33_s15 }
   0xb   :  { %p40_p6 = por %p39_p5, %p38_p4 }
   0xd   :  { %p41_p7 = pnand %p40_p6, %p34_p3 }
   0xf   :  { %44 = shalt.err (!%p41_p7)
}
  0x10   :  { %12 = dma.hbm_to_vmem [thread:$0]  %s76_s0, 16, %s10_s7, [#allocation1]  }
  0x11   :  { %45 = dma.done.wait [#allocation1], 16  }
  0x12   :  { %46 = vsyncadd [#allocation1], 4294967280  ;;  %v16_v0 = vld [vmem:[#allocation0] ss:$0 sm:$0xff] }
  0x13   :  { %17 = vst [vmem:[%s77_s1] sm:$0xff] %v16_v0  ;;  %21 = vst [vmem:[%s77_s1 + $0x8] sm:$0xff] %v16_v0 }
  0x14   :  { %20 = vsyncpa [#allocation1], 1 }

// kernel: tile.24
= control target key start
LH: loop header
LB: loop body
LE: loop exit
PB: predicated region body
PF: predicated region fallthrough
CT: control target
= control target key end

     0   :  { %s131_s10 = smov 60   ;;  %s132_s11 = smov 52   ;;  %vm3_vm0 = vcmask 31744   ;;  %vm9_vm1 = vcmask 523744   ;;  %vm15_vm2 = vcmask 490944   ;;  %vm21_vm3 = vcmask 458144   ;;  %s207_s0 = inlined_call_operand.vmem [shape: f32[16,4], index: 0, kind: input, shape index: {}]   ;;  %s208_s1 = inlined_call_operand.vmem [shape: f32[1,64], index: 1, kind: output, shape index: {}]  }
   0x1   :  { %v101_v0 = vld [vmem:[%s207_s0 + $0xf] sm:$0x1]   ;;  %v103_v1 = vld [vmem:[%s207_s0 + $0xd] sm:$0x1]   ;;  %v102_v2 = vld [vmem:[%s207_s0 + $0xe] sm:$0x1]  }
   0x2   :  { %7 = vrot.lane.b32.xlu0 %v101_v0, %s131_s10  ;;  %19 = vrot.lane.b32.xlu1 %v103_v1, %s132_s11  ;;  %v104_v3 = vld [vmem:[%s207_s0 + $0xc] sm:$0x1]   ;;  %s133_s16 = smov 56   ;;  %s134_s17 = smov 48   ;;  %v105_v4 = vld [vmem:[%s207_s0 + $0xb] sm:$0x1]  }
   0x3   :  { %v106_v5 = vld [vmem:[%s207_s0 + $0xa] sm:$0x1]   ;;  %v2_v6 = vld [vmem:[%s207_s0] sm:$0x1]   ;;  %s135_s24 = smov 44   ;;  %s136_s25 = smov 40  }
   0x4   :  { %4 = vst.msk [vmem:[#allocation0] sm:$0x1] %vm3_vm0, %v2_v6   ;;  %v107_v7 = vld [vmem:[%s207_s0 + $0x9] sm:$0x1]   ;;  %v108_v8 = vld [vmem:[%s207_s0 + $0x8] sm:$0x1]  }
   0x5   :  { %s137_s30 = smov 36   ;;  %s138_s2 = smov 32   ;;  %v109_v9 = vld [vmem:[%s207_s0 + $0x7] sm:$0x1]   ;;  %v110_v10 = vld [vmem:[%s207_s0 + $0x6] sm:$0x1]  }
   0x6   :  { %13 = vrot.lane.b32.xlu0 %v102_v2, %s133_s16  ;;  %25 = vrot.lane.b32.xlu1 %v104_v3, %s134_s17  ;;  %s139_s7 = smov 28   ;;  %s140_s8 = smov 24   ;;  %v111_v11 = vld [vmem:[%s207_s0 + $0x5] sm:$0x1]   ;;  %v112_v12 = vld [vmem:[%s207_s0 + $0x4] sm:$0x1]  }
   0x7   :  { %s141_s13 = smov 20   ;;  %s142_s14 = smov 16   ;;  %v113_v13 = vld [vmem:[%s207_s0 + $0x3] sm:$0x1]   ;;  %v114_v14 = vld [vmem:[%s207_s0 + $0x2] sm:$0x1]  }
   0x8   :  { %s143_s19 = smov 12   ;;  %s144_s20 = smov 8   ;;  %v115_v15 = vld [vmem:[%s207_s0 + $0x1] sm:$0x1]   ;;  %vm27_vm4 = vcmask 425344   ;;  %vm33_vm5 = vcmask 392544  }
   0x9   :  { %s145_s0 = smov 4   ;;  %vm39_vm6 = vcmask 359744   ;;  %vm45_vm7 = vcmask 326944   ;;  %vm51_vm8 = vcmask 294144   ;;  %vm57_vm9 = vcmask 261344  }
   0xa   :  { %31 = vrot.lane.b32.xlu0 %v105_v4, %s135_s24  ;;  %37 = vrot.lane.b32.xlu1 %v106_v5, %s136_s25  ;;  %vm63_vm10 = vcmask 228544   ;;  %vm69_vm11 = vcmask 195744   ;;  %vm75_vm12 = vcmask 162944   ;;  %vm81_vm13 = vcmask 130144  }
   0xb   :  { %vm87_vm14 = vcmask 97344   ;;  %vm93_vm15 = vcmask 64544  }
   0xe   :  { %43 = vrot.lane.b32.xlu0 %v107_v7, %s137_s30  ;;  %49 = vrot.lane.b32.xlu1 %v108_v8, %s138_s2 }
  0x12   :  { %55 = vrot.lane.b32.xlu0 %v109_v9, %s139_s7  ;;  %61 = vrot.lane.b32.xlu1 %v110_v10, %s140_s8 }
  0x16   :  { %67 = vrot.lane.b32.xlu0 %v111_v11, %s141_s13  ;;  %73 = vrot.lane.b32.xlu1 %v112_v12, %s142_s14 }
  0x1a   :  { %79 = vrot.lane.b32.xlu0 %v113_v13, %s143_s19  ;;  %85 = vrot.lane.b32.xlu1 %v114_v14, %s144_s20 }
  0x1e   :  { %91 = vrot.lane.b32.xlu0 %v115_v15, %s145_s0 }
  0x74   :  { %v8_v16 = vpop.permute.xlu0 %7   ;;  %v20_v17 = vpop.permute.xlu1 %19  }
  0x75   :  { %10 = vst.msk [vmem:[#allocation0] sm:$0x1] %vm9_vm1, %v8_v16  }
  0x78   :  { %v14_v18 = vpop.permute.xlu0 %13   ;;  %v26_v19 = vpop.permute.xlu1 %25  }
  0x79   :  { %16 = vst.msk [vmem:[#allocation0] sm:$0x1] %vm15_vm2, %v14_v18  }
  0x7a   :  { %22 = vst.msk [vmem:[#allocation0] sm:$0x1] %vm21_vm3, %v20_v17  }
  0x7b   :  { %28 = vst.msk [vmem:[#allocation0] sm:$0x1] %vm27_vm4, %v26_v19  }
  0x7c   :  { %v32_v20 = vpop.permute.xlu0 %31   ;;  %v38_v21 = vpop.permute.xlu1 %37  }
  0x7d   :  { %34 = vst.msk [vmem:[#allocation0] sm:$0x1] %vm33_vm5, %v32_v20  }
  0x7e   :  { %40 = vst.msk [vmem:[#allocation0] sm:$0x1] %vm39_vm6, %v38_v21  }
  0x80   :  { %v44_v22 = vpop.permute.xlu0 %43   ;;  %v50_v23 = vpop.permute.xlu1 %49  }
  0x81   :  { %46 = vst.msk [vmem:[#allocation0] sm:$0x1] %vm45_vm7, %v44_v22  }
  0x82   :  { %52 = vst.msk [vmem:[#allocation0] sm:$0x1] %vm51_vm8, %v50_v23  }
  0x84   :  { %v56_v24 = vpop.permute.xlu0 %55   ;;  %v62_v25 = vpop.permute.xlu1 %61  }
  0x85   :  { %58 = vst.msk [vmem:[#allocation0] sm:$0x1] %vm57_vm9, %v56_v24  }
  0x86   :  { %64 = vst.msk [vmem:[#allocation0] sm:$0x1] %vm63_vm10, %v62_v25  }
  0x88   :  { %v68_v26 = vpop.permute.xlu0 %67   ;;  %v74_v27 = vpop.permute.xlu1 %73  }
  0x89   :  { %70 = vst.msk [vmem:[#allocation0] sm:$0x1] %vm69_vm11, %v68_v26  }
  0x8a   :  { %76 = vst.msk [vmem:[#allocation0] sm:$0x1] %vm75_vm12, %v74_v27  }
  0x8c   :  { %v80_v28 = vpop.permute.xlu0 %79   ;;  %v86_v29 = vpop.permute.xlu1 %85  }
  0x8d   :  { %82 = vst.msk [vmem:[#allocation0] sm:$0x1] %vm81_vm13, %v80_v28  }
  0x8e   :  { %88 = vst.msk [vmem:[#allocation0] sm:$0x1] %vm87_vm14, %v86_v29  }
  0x90   :  { %v92_v30 = vpop.permute.xlu0 %91  }
  0x91   :  { %94 = vst.msk [vmem:[#allocation0] sm:$0x1] %vm93_vm15, %v92_v30  }
  0x98   :  { %v98_v31 = vld [vmem:[#allocation0] sm:$0x1] }
  0x99   :  { %100 = vst [vmem:[%s208_s1] sm:$0x1] %v98_v31 }

// kernel: tile.33
= control target key start
LH: loop header
LB: loop body
LE: loop exit
PB: predicated region body
PF: predicated region fallthrough
CT: control target
= control target key end

     0   :  { %2 = vsyncpa [#allocation1], 0  ;;  %s47_s6 = smov [#allocation0]   ;;  %s76_s0 = inlined_call_operand.hbm [shape: f32[8], index: 0, kind: input, shape index: {}]   ;;  %s77_s1 = inlined_call_operand.vmem [shape: f32[16,8], index: 1, kind: output, shape index: {}]  }
   0x1   :  { %s9_s7 = sshll.u32 %s47_s6, 4  ;;  %s23_s10 = scalar_lea.hbm %s76_s0, 16  ;;  %s10_s7 = int_to_ptr.vmem [resolvable:$true] %s9_s7 }
   0x2   :  { %p24_p0 = scmp.ne.s32.totalorder %s76_s0, %s23_s10  ;;  %p27_p1 = scmp.lt.u32.totalorder %s23_s10, %s76_s0 }
   0x4   :  { %p29_p2 = pnand %p27_p1, %p24_p0 }
   0x6   :  { %32 = shalt.err (!%p29_p2)
}
   0x7   :  { %s33_s15 = scalar_lea.vmem %s10_s7, 16  ;;  %s37_s16 = scalar_lea.vmem %s10_s7, 32 }
   0x8   :  { %p34_p3 = scmp.ne.s32.totalorder %s10_s7, %s33_s15  ;;  %p38_p4 = scmp.lt.s32.totalorder %s10_s7, %s10_s7 }
   0x9   :  { %p39_p5 = scmp.lt.s32.totalorder %s37_s16, %s33_s15 }
   0xb   :  { %p40_p6 = por %p39_p5, %p38_p4 }
   0xd   :  { %p41_p7 = pnand %p40_p6, %p34_p3 }
   0xf   :  { %44 = shalt.err (!%p41_p7)
}
  0x10   :  { %12 = dma.hbm_to_vmem [thread:$0]  %s76_s0, 16, %s10_s7, [#allocation1]  }
  0x11   :  { %45 = dma.done.wait [#allocation1], 16  }
  0x12   :  { %46 = vsyncadd [#allocation1], 4294967280  ;;  %v16_v0 = vld [vmem:[#allocation0] ss:$0 sm:$0xff] }
  0x13   :  { %17 = vst [vmem:[%s77_s1] sm:$0xff] %v16_v0  ;;  %21 = vst [vmem:[%s77_s1 + $0x8] sm:$0xff] %v16_v0 }
  0x14   :  { %20 = vsyncpa [#allocation1], 1 }

// kernel: tile.34
= control target key start
LH: loop header
LB: loop body
LE: loop exit
PB: predicated region body
PF: predicated region fallthrough
CT: control target
= control target key end

     0   :  { %s131_s10 = smov 120   ;;  %s132_s11 = smov 104   ;;  %vm3_vm0 = vcmask 64512   ;;  %vm9_vm1 = vcmask 1048512   ;;  %vm15_vm2 = vcmask 982912   ;;  %vm21_vm3 = vcmask 917312   ;;  %s207_s0 = inlined_call_operand.vmem [shape: f32[16,8], index: 0, kind: input, shape index: {}]   ;;  %s208_s1 = inlined_call_operand.vmem [shape: f32[1,128], index: 1, kind: output, shape index: {}]  }
   0x1   :  { %v101_v0 = vld [vmem:[%s207_s0 + $0xf] sm:$0x1]   ;;  %v103_v1 = vld [vmem:[%s207_s0 + $0xd] sm:$0x1]   ;;  %v102_v2 = vld [vmem:[%s207_s0 + $0xe] sm:$0x1]  }
   0x2   :  { %7 = vrot.lane.b32.xlu0 %v101_v0, %s131_s10  ;;  %19 = vrot.lane.b32.xlu1 %v103_v1, %s132_s11  ;;  %v104_v3 = vld [vmem:[%s207_s0 + $0xc] sm:$0x1]   ;;  %s133_s16 = smov 112   ;;  %s134_s17 = smov 96   ;;  %v105_v4 = vld [vmem:[%s207_s0 + $0xb] sm:$0x1]  }
   0x3   :  { %v106_v5 = vld [vmem:[%s207_s0 + $0xa] sm:$0x1]   ;;  %v2_v6 = vld [vmem:[%s207_s0] sm:$0x1]   ;;  %s135_s24 = smov 88   ;;  %s136_s25 = smov 80  }
   0x4   :  { %4 = vst.msk [vmem:[#allocation0] sm:$0x1] %vm3_vm0, %v2_v6   ;;  %v107_v7 = vld [vmem:[%s207_s0 + $0x9] sm:$0x1]   ;;  %v108_v8 = vld [vmem:[%s207_s0 + $0x8] sm:$0x1]  }
   0x5   :  { %s137_s30 = smov 72   ;;  %s138_s2 = smov 64   ;;  %v109_v9 = vld [vmem:[%s207_s0 + $0x7] sm:$0x1]   ;;  %v110_v10 = vld [vmem:[%s207_s0 + $0x6] sm:$0x1]  }
   0x6   :  { %13 = vrot.lane.b32.xlu0 %v102_v2, %s133_s16  ;;  %25 = vrot.lane.b32.xlu1 %v104_v3, %s134_s17  ;;  %s139_s7 = smov 56   ;;  %s140_s8 = smov 48   ;;  %v111_v11 = vld [vmem:[%s207_s0 + $0x5] sm:$0x1]   ;;  %v112_v12 = vld [vmem:[%s207_s0 + $0x4] sm:$0x1]  }
   0x7   :  { %s141_s13 = smov 40   ;;  %s142_s14 = smov 32   ;;  %v113_v13 = vld [vmem:[%s207_s0 + $0x3] sm:$0x1]   ;;  %v114_v14 = vld [vmem:[%s207_s0 + $0x2] sm:$0x1]  }
   0x8   :  { %s143_s19 = smov 24   ;;  %s144_s20 = smov 16   ;;  %v115_v15 = vld [vmem:[%s207_s0 + $0x1] sm:$0x1]   ;;  %vm27_vm4 = vcmask 851712   ;;  %vm33_vm5 = vcmask 786112  }
   0x9   :  { %s145_s0 = smov 8   ;;  %vm39_vm6 = vcmask 720512   ;;  %vm45_vm7 = vcmask 654912   ;;  %vm51_vm8 = vcmask 589312   ;;  %vm57_vm9 = vcmask 523712  }
   0xa   :  { %31 = vrot.lane.b32.xlu0 %v105_v4, %s135_s24  ;;  %37 = vrot.lane.b32.xlu1 %v106_v5, %s136_s25  ;;  %vm63_vm10 = vcmask 458112   ;;  %vm69_vm11 = vcmask 392512   ;;  %vm75_vm12 = vcmask 326912   ;;  %vm81_vm13 = vcmask 261312  }
   0xb   :  { %vm87_vm14 = vcmask 195712   ;;  %vm93_vm15 = vcmask 130112  }
   0xe   :  { %43 = vrot.lane.b32.xlu0 %v107_v7, %s137_s30  ;;  %49 = vrot.lane.b32.xlu1 %v108_v8, %s138_s2 }
  0x12   :  { %55 = vrot.lane.b32.xlu0 %v109_v9, %s139_s7  ;;  %61 = vrot.lane.b32.xlu1 %v110_v10, %s140_s8 }
  0x16   :  { %67 = vrot.lane.b32.xlu0 %v111_v11, %s141_s13  ;;  %73 = vrot.lane.b32.xlu1 %v112_v12, %s142_s14 }
  0x1a   :  { %79 = vrot.lane.b32.xlu0 %v113_v13, %s143_s19  ;;  %85 = vrot.lane.b32.xlu1 %v114_v14, %s144_s20 }
  0x1e   :  { %91 = vrot.lane.b32.xlu0 %v115_v15, %s145_s0 }
  0x74   :  { %v8_v16 = vpop.permute.xlu0 %7   ;;  %v20_v17 = vpop.permute.xlu1 %19  }
  0x75   :  { %10 = vst.msk [vmem:[#allocation0] sm:$0x1] %vm9_vm1, %v8_v16  }
  0x78   :  { %v14_v18 = vpop.permute.xlu0 %13   ;;  %v26_v19 = vpop.permute.xlu1 %25  }
  0x79   :  { %16 = vst.msk [vmem:[#allocation0] sm:$0x1] %vm15_vm2, %v14_v18  }
  0x7a   :  { %22 = vst.msk [vmem:[#allocation0] sm:$0x1] %vm21_vm3, %v20_v17  }
  0x7b   :  { %28 = vst.msk [vmem:[#allocation0] sm:$0x1] %vm27_vm4, %v26_v19  }
  0x7c   :  { %v32_v20 = vpop.permute.xlu0 %31   ;;  %v38_v21 = vpop.permute.xlu1 %37  }
  0x7d   :  { %34 = vst.msk [vmem:[#allocation0] sm:$0x1] %vm33_vm5, %v32_v20  }
  0x7e   :  { %40 = vst.msk [vmem:[#allocation0] sm:$0x1] %vm39_vm6, %v38_v21  }
  0x80   :  { %v44_v22 = vpop.permute.xlu0 %43   ;;  %v50_v23 = vpop.permute.xlu1 %49  }
  0x81   :  { %46 = vst.msk [vmem:[#allocation0] sm:$0x1] %vm45_vm7, %v44_v22  }
  0x82   :  { %52 = vst.msk [vmem:[#allocation0] sm:$0x1] %vm51_vm8, %v50_v23  }
  0x84   :  { %v56_v24 = vpop.permute.xlu0 %55   ;;  %v62_v25 = vpop.permute.xlu1 %61  }
  0x85   :  { %58 = vst.msk [vmem:[#allocation0] sm:$0x1] %vm57_vm9, %v56_v24  }
  0x86   :  { %64 = vst.msk [vmem:[#allocation0] sm:$0x1] %vm63_vm10, %v62_v25  }
  0x88   :  { %v68_v26 = vpop.permute.xlu0 %67   ;;  %v74_v27 = vpop.permute.xlu1 %73  }
  0x89   :  { %70 = vst.msk [vmem:[#allocation0] sm:$0x1] %vm69_vm11, %v68_v26  }
  0x8a   :  { %76 = vst.msk [vmem:[#allocation0] sm:$0x1] %vm75_vm12, %v74_v27  }
  0x8c   :  { %v80_v28 = vpop.permute.xlu0 %79   ;;  %v86_v29 = vpop.permute.xlu1 %85  }
  0x8d   :  { %82 = vst.msk [vmem:[#allocation0] sm:$0x1] %vm81_vm13, %v80_v28  }
  0x8e   :  { %88 = vst.msk [vmem:[#allocation0] sm:$0x1] %vm87_vm14, %v86_v29  }
  0x90   :  { %v92_v30 = vpop.permute.xlu0 %91  }
  0x91   :  { %94 = vst.msk [vmem:[#allocation0] sm:$0x1] %vm93_vm15, %v92_v30  }
  0x98   :  { %v98_v31 = vld [vmem:[#allocation0] sm:$0x1] }
  0x99   :  { %100 = vst [vmem:[%s208_s1] sm:$0x1] %v98_v31 }

// kernel: _lambda_.1
= control target key start
LH: loop header
LB: loop body
LE: loop exit
PB: predicated region body
PF: predicated region fallthrough
CT: control target
= control target key end

     0   :  { %vm49_vm0 = vsmask.f32 3328  ;;  %vm50_vm1 = vsmask.f32 7440  ;;  %vm337_vm2 = vcmask 1042432   ;;  %vm338_vm3 = vcmask 1046532   ;;  %s1631_s1 = inlined_call_operand.vmem [shape: bf16[3,128,64], index: 1, kind: input, shape index: {}]   ;;  %s1632_s0 = inlined_call_operand.vmem [shape: bf16[2,18,128], index: 0, kind: input, shape index: {}]   ;;  %s1633_s4 = inlined_call_operand.vmem [shape: bf16[3,64,128], index: 4, kind: input, shape index: {}]   ;;  %s1634_s2 = inlined_call_operand.vmem [shape: f32[1,64], index: 2, kind: input, shape index: {}]   ;;  %s1635_s3 = inlined_call_operand.vmem [shape: f32[1,64], index: 3, kind: input, shape index: {}]   ;;  %s1636_s5 = inlined_call_operand.vmem [shape: f32[1,128], index: 5, kind: input, shape index: {}]   ;;  %s1637_s6 = inlined_call_operand.vmem [shape: f32[1,128], index: 6, kind: input, shape index: {}]   ;;  %s1638_s7 = inlined_call_operand.vmem [shape: f32[2,16,128], index: 7, kind: output, shape index: {}]  }
   0x1   :  { %v1270_v0 = vld [vmem:[%s1631_s1] sm:$0xff]   ;;  %v1271_v1 = vld [vmem:[%s1631_s1 + $0x8] sm:$0xff]   ;;  %v1272_v2 = vld [vmem:[%s1631_s1 + $0x10] sm:$0xff]   ;;  %vm506_vm6 = vcmask 516096   ;;  %vm507_vm7 = vsmask.f32 256 }
   0x2   :  { %1178 = vmatprep.subr.bf16.mxu0 %v1270_v0  ;;  %v1273_v3 = vld [vmem:[%s1631_s1 + $0x18] sm:$0xff]   ;;  %v1278_v4 = vld [vmem:[%s1631_s1 + $0x40] sm:$0xff]   ;;  %v1281_v10 = vld [vmem:[%s1631_s1 + $0x48] sm:$0xff]   ;;  %vm515_vm9 = vsmask.f32 7938  ;;  %vm577_vm11 = vcmask 519168  }
   0x3   :  { %1179 = vmatpush3.bf16.msra.mxu0 %v1270_v0  ;;  %v27_v5 = vld [vmem:[%s1632_s0] sm:$0xf]  ;;  %v1371_v6 = vld [vmem:[%s1632_s0 + $0x4] sm:$0xf]  ;;  %1158 = vmatprep.subr.bf16.mxu1 %v1278_v4  ;;  %v1284_v15 = vld [vmem:[%s1631_s1 + $0x50] sm:$0xff]   ;;  %vm695_vm15 = vcmask 523264  }
   0x4   :  { %1180 = vmatprep.subr.bf16.mxu0 %v1271_v1  ;;  %v53_v7 = vshrl.u32 %v27_v5, 16  ;;  %v56_v8 = vshll.u32 %v27_v5, 16  ;;  %v1018_v9 = vcombine.low %v27_v5, %v1371_v6  ;;  %1159 = vmatpush3.bf16.msra.mxu1 %v1278_v4  ;;  %v1274_v11 = vld [vmem:[%s1631_s1 + $0x20] sm:$0xff]   ;;  %v66_v13 = vshrl.u32 %v1371_v6, 16  ;;  %v1387_v16 = vld [vmem:[%s1632_s0 + $0xc] sm:$0xf]  ;;  %vm1423_vm4 = vmor %vm49_vm0, %vm50_vm1 }
   0x5   :  { %1160 = vmatprep.subr.bf16.mxu1 %v1281_v10  ;;  %v1275_v17 = vld [vmem:[%s1631_s1 + $0x28] sm:$0xff]   ;;  %v1395_v18 = vld [vmem:[%s1632_s0 + $0x10] sm:$0xf]  ;;  %v77_v19 = vshrl.u32 %v1387_v16, 16  ;;  %v1286_v20 = vld [vmem:[%s1631_s1 + $0x58] sm:$0xff]   ;;  %v62_v21 = vshll.u32 %v1371_v6, 16 }
   0x6   :  { %1194 = vmatprep.mubr.bf16.mxu0 %v1018_v9  ;;  %v55_v12 = vrot.slane %v53_v7, 4  ;;  %v58_v14 = vrot.slane %v56_v8, 5  ;;  %v1276_v22 = vld [vmem:[%s1631_s1 + $0x30] sm:$0xff]   ;;  %v80_v23 = vshll.u32 %v1387_v16, 16  ;;  %v68_v24 = vrot.slane %v66_v13, 4  ;;  %v1288_v28 = vld [vmem:[%s1631_s1 + $0x60] sm:$0xff]   ;;  %vm1437_vm5 = vmor %vm337_vm2, %vm338_vm3 }
   0x7   :  { %1181 = vmatpush3.bf16.msra.mxu0 %v1271_v1  ;;  %v90_v25 = vshrl.u32 %v1395_v18, 16  ;;  %v64_v27 = vrot.slane %v62_v21, 5  ;;  %v342_v29 = vrot.slane %v1371_v6, 5  ;;  %v86_v31 = vshll.u32 %v1395_v18, 16  ;;  %v1277_v32 = vld [vmem:[%s1631_s1 + $0x38] sm:$0xff]   ;;  %v1290_v37 = vld [vmem:[%s1631_s1 + $0x68] sm:$0xff]   ;;  %vm1496_vm8 = vmand %vm506_vm6, %vm507_vm7 }
   0x8   :  { %1182 = vmatprep.subr.bf16.mxu0 %v1272_v2  ;;  %1161 = vmatpush3.bf16.msra.mxu1 %v1281_v10  ;;  %v59_v26 = vor.u32 %v58_v14, %v55_v12  ;;  %v79_v33 = vrot.slane %v77_v19, 4  ;;  %v82_v34 = vrot.slane %v80_v23, 5  ;;  %v47_v39 = vld [vmem:[%s1632_s0 + $0x8] sm:$0x1]  ;;  %v1430_v46 = vld [vmem:[%s1632_s0 + $0x14] sm:$0x1]  ;;  %v1019_v56 = vcombine.low %v1387_v16, %v1395_v18  ;;  %vm516_vm10 = vmand %vm506_vm6, %vm515_vm9 }
   0x9   :  { %1162 = vmatprep.subr.bf16.mxu1 %v1284_v15  ;;  %v69_v30 = vor.u32 %v68_v24, %v64_v27  ;;  %v92_v36 = vrot.slane %v90_v25, 4  ;;  %v88_v38 = vrot.slane %v86_v31, 5  ;;  %v344_v42 = vrot.slane %v342_v29, 4  ;;  %v331_v48 = vld [vmem:[%s1632_s0] sm:$0xe]  ;;  %v1292_v51 = vld [vmem:[%s1631_s1 + $0x70] sm:$0xff]   ;;  %vm1531_vm13 = vmand %vm577_vm11, %vm515_vm9 }
   0xa   :  { %v60_v35 = vrot.slane %v59_v26, 4  ;;  %v72_v43 = vshll.u32 %v47_v39, 16  ;;  %v345_v44 = vrot.slane %v47_v39, 5  ;;  %v83_v45 = vor.u32 %v82_v34, %v79_v33  ;;  %v1280_v50 = vld [vmem:[%s1631_s1 + $0x80] sm:$0xff]   ;;  %v1283_v0 = vld [vmem:[%s1631_s1 + $0x88] sm:$0xff]   ;;  %v1294_v1 = vld [vmem:[%s1631_s1 + $0x78] sm:$0xff]  }
   0xb   :  { %1183 = vmatpush3.bf16.msra.mxu0 %v1272_v2  ;;  %v70_v41 = vrot.slane %v69_v30, 4  ;;  %v93_v47 = vor.u32 %v92_v36, %v88_v38  ;;  %v96_v54 = vshll.u32 %v1430_v46, 16  ;;  %v1028_v55 = vrot.slane %v331_v48, 9  ;;  %v1285_v5 = vld [vmem:[%s1631_s1 + $0x90] sm:$0xff]   ;;  %v1287_v7 = vld [vmem:[%s1631_s1 + $0x98] sm:$0xff]   ;;  %v1289_v8 = vld [vmem:[%s1631_s1 + $0xa0] sm:$0xff]  }
   0xc   :  { %1184 = vmatprep.subr.bf16.mxu0 %v1273_v3  ;;  %1163 = vmatpush3.bf16.msra.mxu1 %v1284_v15  ;;  %v65_v52 = vsel %vm1423_vm4, %v60_v35, %v64_v27  ;;  %v74_v53 = vrot.slane %v72_v43, 5  ;;  %v84_v58 = vrot.slane %v83_v45, 4  ;;  %v346_v59 = vsel %vm1437_vm5, %v344_v42, %v345_v44  ;;  %v1291_v9 = vld [vmem:[%s1631_s1 + $0xa8] sm:$0xff]   ;;  %v1295_v16 = vld [vmem:[%s1631_s1 + $0xb8] sm:$0xff]   ;;  %v520_v24 = vld [vmem:[#allocation2 + $0x14] sm:$0x1] }
   0xd   :  { %1164 = vmatprep.subr.bf16.mxu1 %v1286_v20  ;;  %v94_v61 = vrot.slane %v93_v47, 4  ;;  %v98_v62 = vrot.slane %v96_v54, 5  ;;  %v343_v63 = vsel %vm1437_vm5, %v1028_v55, %v342_v29  ;;  %v349_v10 = vrot.slane %v1395_v18, 5  ;;  %v332_v12 = vld [vmem:[%s1632_s0 + $0xc] sm:$0xe]  ;;  %v1296_v29 = vld [vmem:[%s1633_s4 + $0x20] sm:$0xff]  }
   0xe   :  { %v75_v57 = vsel %vm1423_vm4, %v70_v41, %v74_v53  ;;  %v1046_v2 = vcombine.low %v343_v63, %v346_v59  ;;  %v352_v13 = vrot.slane %v1430_v46, 5  ;;  %v1029_v14 = vrot.slane %v332_v12, 9  ;;  %v512_v21 = vld [vmem:[#allocation2 + $0xc] sm:$0x1]  ;;  %v509_v25 = vld [vmem:[#allocation2] sm:$0x1] }
   0xf   :  { %1185 = vmatpush3.bf16.msra.mxu0 %v1273_v3  ;;  %v1008_v60 = vcombine.low %v65_v52, %v75_v57  ;;  %v89_v3 = vsel %vm1423_vm4, %v84_v58, %v88_v38  ;;  %v99_v4 = vsel %vm1423_vm4, %v94_v61, %v98_v62  ;;  %v351_v15 = vrot.slane %v349_v10, 4  ;;  %v1297_v30 = vld [vmem:[%s1633_s4 + $0x28] sm:$0xff]   ;;  %v1298_v31 = vld [vmem:[%s1633_s4 + $0x30] sm:$0xff]   ;;  %v1520_v33 = vld [vmem:[%s1633_s4] sm:$0xff]  }
  0x10   :  { %1186 = vmatprep.subr.bf16.mxu0 %v1274_v11  ;;  %1165 = vmatpush3.bf16.msra.mxu1 %v1286_v20  ;;  %v1009_v6 = vcombine.low %v89_v3, %v99_v4  ;;  %v513_v23 = vsel %vm1496_vm8, 0, %v512_v21  ;;  %v521_v27 = vsel %vm516_vm10, 0, %v520_v24  ;;  %v1056_v39 = vld [vmem:[%s1634_s2] ss:$0 sm:$0xff]  ;;  %vm535_vm12 = vsmask.f32 4368 }
  0x11   :  { %1166 = vmatprep.subr.bf16.mxu1 %v1288_v28  ;;  %1174 = vmatprep.mubr.bf16.mxu1 %v1008_v60  ;;  %v353_v18 = vsel %vm1437_vm5, %v351_v15, %v352_v13  ;;  %514 = vst [vmem:[#allocation2 + $0xc] sm:$0x1] %v513_v23  ;;  %522 = vst [vmem:[#allocation2 + $0x14] sm:$0x1] %v521_v27  ;;  %v1057_v43 = vld [vmem:[%s1635_s3] ss:$0 sm:$0xff] }
  0x12   :  { %vm1536_vm14 = vmor %vm507_vm7, %vm535_vm12  ;;  %v1303_v40 = vld [vmem:[%s1633_s4 + $0x10] sm:$0xff]  }
  0x13   :  { %1187 = vmatpush3.bf16.msra.mxu0 %v1274_v11  ;;  %v1293_v11 = vld [vmem:[%s1631_s1 + $0xb0] sm:$0xff]  }
  0x14   :  { %1188 = vmatprep.subr.bf16.mxu0 %v1275_v17  ;;  %1167 = vmatpush3.bf16.msra.mxu1 %v1288_v28  ;;  %v510_v28 = vsel %vm1496_vm8, 0, %v509_v25 }
  0x15   :  { %1168 = vmatprep.subr.bf16.mxu1 %v1290_v37  ;;  %511 = vst [vmem:[#allocation2] sm:$0x1] %v510_v28 }
  0x17   :  { %1189 = vmatpush3.bf16.msra.mxu0 %v1275_v17  ;;  %v350_v17 = vsel %vm1437_vm5, %v1029_v14, %v349_v10 }
  0x18   :  { %1190 = vmatprep.subr.bf16.mxu0 %v1276_v22  ;;  %1169 = vmatpush3.bf16.msra.mxu1 %v1290_v37  ;;  %v1047_v19 = vcombine.low %v350_v17, %v353_v18  ;;  %v591_v18 = vld [vmem:[#allocation2 + $0x14] sm:$0x1] }
  0x19   :  { %1170 = vmatprep.subr.bf16.mxu1 %v1292_v51 }
  0x1b   :  { %1191 = vmatpush3.bf16.msra.mxu0 %v1276_v22  ;;  %v517_v22 = vld [vmem:[#allocation2 + $0x8] sm:$0x1] }
  0x1c   :  { %1192 = vmatprep.subr.bf16.mxu0 %v1277_v32  ;;  %1171 = vmatpush3.bf16.msra.mxu1 %v1292_v51  ;;  %v518_v26 = vsel %vm516_vm10, 0, %v517_v22  ;;  %v579_v13 = vld [vmem:[#allocation2] sm:$0xf] }
  0x1d   :  { %1172 = vmatprep.subr.bf16.mxu1 %v1294_v1  ;;  %519 = vst [vmem:[#allocation2 + $0x8] sm:$0x1] %v518_v26 }
  0x1f   :  { %1193 = vmatpush3.bf16.msra.mxu0 %v1277_v32  ;;  %v1299_v32 = vld [vmem:[%s1633_s4 + $0x38] sm:$0xff]  }
  0x20   :  { %1198 = vmatprep.subr.bf16.mxu0 %v1280_v50  ;;  %1173 = vmatpush3.bf16.msra.mxu1 %v1294_v1 }
  0x21   :  { %1218 = vmatprep.subr.bf16.mxu1 %v1296_v29 }
  0x22   :  { %1195 = vmatmul.mubr.bf16.vlgmr.msra.gmra.mrb[0].mxu0 %v1019_v56 }
  0x23   :  { %1199 = vmatpush3.bf16.msra.mxu0 %v1280_v50  ;;  %1214 = vmatprep.mubr.bf16.mxu0 %v1046_v2 }
  0x24   :  { %1200 = vmatprep.subr.bf16.mxu0 %v1283_v0  ;;  %1175 = vmatmul.mubr.bf16.vlgmr.msra.gmra.mrb[0].mxu1 %v1009_v6  ;;  %v584_v26 = vld [vmem:[#allocation2 + $0x8] sm:$0x1] }
  0x25   :  { %1219 = vmatpush3.bf16.msra.mxu1 %v1296_v29 }
  0x26   :  { %1220 = vmatprep.subr.bf16.mxu1 %v1297_v30 }
  0x27   :  { %1201 = vmatpush3.bf16.msra.mxu0 %v1283_v0 }
  0x28   :  { %1202 = vmatprep.subr.bf16.mxu0 %v1285_v5 }
  0x29   :  { %1221 = vmatpush3.bf16.msra.mxu1 %v1297_v30 }
  0x2a   :  { %1222 = vmatprep.subr.bf16.mxu1 %v1298_v31 }
  0x2b   :  { %1203 = vmatpush3.bf16.msra.mxu0 %v1285_v5 }
  0x2c   :  { %1204 = vmatprep.subr.bf16.mxu0 %v1287_v7 }
  0x2d   :  { %1223 = vmatpush3.bf16.msra.mxu1 %v1298_v31 }
  0x2e   :  { %1224 = vmatprep.subr.bf16.mxu1 %v1299_v32 }
  0x2f   :  { %1205 = vmatpush3.bf16.msra.mxu0 %v1287_v7 }
  0x30   :  { %1206 = vmatprep.subr.bf16.mxu0 %v1289_v8 }
  0x31   :  { %1225 = vmatpush3.bf16.msra.mxu1 %v1299_v32 }
  0x32   :  { %1230 = vmatprep.subr.bf16.mxu1 %v1520_v33 }
  0x33   :  { %1207 = vmatpush3.bf16.msra.mxu0 %v1289_v8  ;;  %v587_v8 = vld [vmem:[#allocation2 + $0xc] sm:$0xf] }
  0x34   :  { %1208 = vmatprep.subr.bf16.mxu0 %v1291_v9 }
  0x37   :  { %1209 = vmatpush3.bf16.msra.mxu0 %v1291_v9 }
  0x38   :  { %1210 = vmatprep.subr.bf16.mxu0 %v1293_v11 }
  0x3b   :  { %1211 = vmatpush3.bf16.msra.mxu0 %v1293_v11 }
  0x3c   :  { %1212 = vmatprep.subr.bf16.mxu0 %v1295_v16 }
  0x3f   :  { %1213 = vmatpush3.bf16.msra.mxu0 %v1295_v16 }
  0x42   :  { %1215 = vmatmul.mubr.bf16.vlgmr.msra.gmra.mrb[0].mxu0 %v1047_v19 }
  0xf7   :  { %v1176_v34 = vpop.f32.mrb[0].mxu1 }
  0xf8   :  { %v207_v35 = vpop.f32.mrb[1].mxu1 }
  0xf9   :  { %v1177_v36 = vpop.f32.mrb[2].mxu1 }
  0xfa   :  { %v210_v37 = vpop.f32.mrb[3].mxu1 }
 0x115   :  { %v1216_v38 = vpop.f32.mrb[0].mxu0 }
 0x116   :  { %v1254_v41 = vadd.f32 %v1216_v38, %v1176_v34  ;;  %v461_v42 = vpop.f32.mrb[1].mxu0 }
 0x117   :  { %v1255_v44 = vadd.f32 %v461_v42, %v207_v35  ;;  %v1217_v45 = vpop.f32.mrb[2].mxu0 }
 0x118   :  { %v489_v46 = vmul.f32 %v1254_v41, %v1056_v39  ;;  %v1256_v47 = vadd.f32 %v1217_v45, %v1177_v36  ;;  %v464_v48 = vpop.f32.mrb[3].mxu0 }
 0x119   :  { %v487_v50 = vmul.f32 %v1255_v44, %v1056_v39  ;;  %v1257_v51 = vadd.f32 %v464_v48, %v210_v37 }
 0x11a   :  { %v500_v52 = vadd.f32 %v1057_v43, %v489_v46  ;;  %v490_v53 = vmul.f32 %v1256_v47, %v1056_v39 }
 0x11b   :  { %v498_v54 = vadd.f32 %v1057_v43, %v487_v50  ;;  %v488_v55 = vmul.f32 %v1257_v51, %v1056_v39 }
 0x11c   :  { %v504_v56 = vmax.f32 %v500_v52, 0.0  ;;  %v501_v57 = vadd.f32 %v1057_v43, %v490_v53 }
 0x11d   :  { %v502_v58 = vmax.f32 %v498_v54, 0.0  ;;  %v499_v59 = vadd.f32 %v1057_v43, %v488_v55 }
 0x11e   :  { %v1108_v60 = vpack.c.bf16 %v504_v56, %v504_v56  ;;  %v505_v61 = vmax.f32 %v501_v57, 0.0 }
 0x11f   :  { %v1106_v62 = vpack.c.bf16 %v502_v58, %v502_v58  ;;  %v503_v63 = vmax.f32 %v499_v59, 0.0 }
 0x120   :  { %v555_v0 = vshrl.u32 %v1108_v60, 16  ;;  %v1109_v1 = vpack.c.bf16 %v505_v61, %v505_v61  ;;  %v558_v5 = vshll.u32 %v1108_v60, 16 }
 0x121   :  { %v538_v2 = vshrl.u32 %v1106_v62, 16  ;;  %v1107_v3 = vpack.c.bf16 %v503_v63, %v503_v63  ;;  %v541_v10 = vshll.u32 %v1106_v62, 16 }
 0x122   :  { %v557_v4 = vrot.slane %v555_v0, 7  ;;  %v563_v6 = vshrl.u32 %v1109_v1, 16  ;;  %v566_v15 = vshll.u32 %v1109_v1, 16 }
 0x123   :  { %v540_v9 = vrot.slane %v538_v2, 7  ;;  %v546_v11 = vshrl.u32 %v1107_v3, 16  ;;  %v549_v21 = vshll.u32 %v1107_v3, 16 }
 0x124   :  { %v560_v12 = vor.u32 %v558_v5, %v557_v4  ;;  %v565_v14 = vrot.slane %v563_v6, 7  ;;  %v561_v22 = vrot.slane %v557_v4, 4 }
 0x125   :  { %v543_v16 = vor.u32 %v541_v10, %v540_v9  ;;  %v548_v19 = vrot.slane %v546_v11, 7  ;;  %v544_v27 = vrot.slane %v540_v9, 4 }
 0x126   :  { %v588_v23 = vsel %vm1531_vm13, %v560_v12, %v587_v8  ;;  %v568_v24 = vor.u32 %v566_v15, %v565_v14  ;;  %v570_v25 = vrot.slane %v565_v14, 4 }
 0x127   :  { %589 = vst [vmem:[#allocation2 + $0xc] sm:$0xf] %v588_v23  ;;  %v580_v28 = vsel %vm1531_vm13, %v543_v16, %v579_v13  ;;  %v551_v29 = vor.u32 %v549_v21, %v548_v19  ;;  %v553_v30 = vrot.slane %v548_v19, 4  ;;  %v1302_v13 = vld [vmem:[%s1633_s4 + $0x8] sm:$0xff]   ;;  %v1304_v16 = vld [vmem:[%s1633_s4 + $0x18] sm:$0xff]  }
 0x128   :  { %581 = vst [vmem:[#allocation2] sm:$0xf] %v580_v28  ;;  %v569_v31 = vsel %vm1536_vm14, %v561_v22, %v568_v24  ;;  %v592_v32 = vsel %vm1496_vm8, %v570_v25, %v591_v18  ;;  %v1307_v25 = vld [vmem:[%s1633_s4 + $0x48] sm:$0xff]  }
 0x129   :  { %590 = vst.msk [vmem:[#allocation2 + $0x10] sm:$0xf] %vm577_vm11, %v569_v31  ;;  %593 = vst [vmem:[#allocation2 + $0x14] sm:$0x1] %v592_v32  ;;  %v552_v34 = vsel %vm1536_vm14, %v544_v27, %v551_v29  ;;  %v585_v35 = vsel %vm1496_vm8, %v553_v30, %v584_v26  ;;  %v1308_v27 = vld [vmem:[%s1633_s4 + $0x50] sm:$0xff]   ;;  %v1309_v29 = vld [vmem:[%s1633_s4 + $0x58] sm:$0xff]  }
 0x12a   :  { %583 = vst.msk [vmem:[#allocation2 + $0x4] sm:$0xf] %vm577_vm11, %v552_v34  ;;  %586 = vst [vmem:[#allocation2 + $0x8] sm:$0x1] %v585_v35 }
 0x12e   :  { %v1554_v36 = vld [vmem:[#allocation2 + $0xc] sm:$0xf] }
 0x12f   :  { %v594_v37 = vld [vmem:[#allocation2] sm:$0xf]  ;;  %v633_v38 = vshrl.u32 %v1554_v36, 16  ;;  %v636_v39 = vshll.u32 %v1554_v36, 16  ;;  %v841_v31 = vld [vmem:[#allocation2 + $0xc] sm:$0xe] }
 0x130   :  { %v609_v41 = vshrl.u32 %v594_v37, 16  ;;  %v612_v42 = vshll.u32 %v594_v37, 16  ;;  %v1558_v43 = vld [vmem:[#allocation2 + $0x10] sm:$0xf]  ;;  %v1560_v52 = vld [vmem:[#allocation2 + $0x14] sm:$0x1] }
 0x131   :  { %v595_v44 = vld [vmem:[#allocation2 + $0x4] sm:$0xf]  ;;  %v606_v45 = vld [vmem:[#allocation2 + $0x8] sm:$0x1]  ;;  %v635_v46 = vrot.slane %v633_v38, 4  ;;  %v638_v47 = vrot.slane %v636_v39, 5  ;;  %v1079_v23 = vcombine.low %v1554_v36, %v1558_v43 }
 0x132   :  { %v611_v20 = vrot.slane %v609_v41, 4  ;;  %v614_v48 = vrot.slane %v612_v42, 5  ;;  %v618_v50 = vshll.u32 %v595_v44, 16  ;;  %v622_v51 = vshrl.u32 %v595_v44, 16  ;;  %v840_v18 = vld [vmem:[#allocation2] sm:$0xe] }
 0x133   :  { %v639_v53 = vor.u32 %v638_v47, %v635_v46  ;;  %v642_v54 = vshll.u32 %v1558_v43, 16  ;;  %v646_v55 = vshrl.u32 %v1558_v43, 16  ;;  %v628_v59 = vshll.u32 %v606_v45, 16  ;;  %v1104_v38 = vld [vmem:[%s1636_s5] ss:$0 sm:$0xff] }
 0x134   :  { %v615_v56 = vor.u32 %v614_v48, %v611_v20  ;;  %v620_v57 = vrot.slane %v618_v50, 5  ;;  %v624_v58 = vrot.slane %v622_v51, 4  ;;  %v652_v62 = vshll.u32 %v1560_v52, 16  ;;  %v1105_v41 = vld [vmem:[%s1637_s6] ss:$0 sm:$0xff] }
 0x135   :  { %v644_v60 = vrot.slane %v642_v54, 5  ;;  %v648_v61 = vrot.slane %v646_v55, 4  ;;  %v640_v1 = vrot.slane %v639_v53, 4  ;;  %v630_v4 = vrot.slane %v628_v59, 5 }
 0x136   :  { %v616_v63 = vrot.slane %v615_v56, 4  ;;  %v625_v0 = vor.u32 %v624_v58, %v620_v57  ;;  %v654_v6 = vrot.slane %v652_v62, 5  ;;  %v1078_v14 = vcombine.low %v594_v37, %v595_v44 }
 0x137   :  { %v649_v2 = vor.u32 %v648_v61, %v644_v60  ;;  %v645_v10 = vsel %vm1423_vm4, %v640_v1, %v644_v60  ;;  %v848_v15 = vrot.slane %v595_v44, 5  ;;  %v851_v19 = vrot.slane %v606_v45, 5 }
 0x138   :  { %v626_v3 = vrot.slane %v625_v0, 4  ;;  %v621_v7 = vsel %vm1423_vm4, %v616_v63, %v620_v57  ;;  %v1086_v21 = vrot.slane %v840_v18, 9  ;;  %v855_v28 = vrot.slane %v1558_v43, 5 }
 0x139   :  { %v650_v5 = vrot.slane %v649_v2, 4  ;;  %v850_v17 = vrot.slane %v848_v15, 4  ;;  %v858_v32 = vrot.slane %v1560_v52, 5  ;;  %v1087_v34 = vrot.slane %v841_v31, 9 }
 0x13a   :  { %v631_v8 = vsel %vm1423_vm4, %v626_v3, %v630_v4  ;;  %v849_v24 = vsel %vm1437_vm5, %v1086_v21, %v848_v15  ;;  %v857_v30 = vrot.slane %v855_v28, 4 }
 0x13b   :  { %v1070_v9 = vcombine.low %v621_v7, %v631_v8  ;;  %v655_v11 = vsel %vm1423_vm4, %v650_v5, %v654_v6  ;;  %v852_v22 = vsel %vm1437_vm5, %v850_v17, %v851_v19  ;;  %v856_v36 = vsel %vm1437_vm5, %v1087_v34, %v855_v28 }
 0x13c   :  { %v1071_v12 = vcombine.low %v645_v10, %v655_v11  ;;  %v1096_v26 = vcombine.low %v849_v24, %v852_v22  ;;  %v859_v35 = vsel %vm1437_vm5, %v857_v30, %v858_v32 }
 0x13d   :  { %1226 = vmatprep.mubr.msk.bf16.mxu1 %vm695_vm15, %v1070_v9  ;;  %v1097_v37 = vcombine.low %v856_v36, %v859_v35 }
 0x13e   :  { %1227 = vmatmul.mubr.msk.bf16.vlgmr.msra.gmra.mrb[4].mxu1 %vm695_vm15, %v1071_v12 }
 0x13f   :  { %1231 = vmatpush3.bf16.msra.mxu1 %v1520_v33  ;;  %1238 = vmatprep.mubr.msk.bf16.mxu1 %vm695_vm15, %v1078_v14  ;;  %v1306_v33 = vld [vmem:[%s1633_s4 + $0x40] sm:$0xff]  }
 0x140   :  { %1232 = vmatprep.subr.bf16.mxu1 %v1302_v13 }
 0x143   :  { %1233 = vmatpush3.bf16.msra.mxu1 %v1302_v13 }
 0x144   :  { %1234 = vmatprep.subr.bf16.mxu1 %v1303_v40 }
 0x147   :  { %1235 = vmatpush3.bf16.msra.mxu1 %v1303_v40 }
 0x148   :  { %1236 = vmatprep.subr.bf16.mxu1 %v1304_v16 }
 0x14b   :  { %1237 = vmatpush3.bf16.msra.mxu1 %v1304_v16 }
 0x14c   :  { %1242 = vmatprep.subr.bf16.mxu1 %v1306_v33 }
 0x14e   :  { %1239 = vmatmul.mubr.msk.bf16.vlgmr.msra.gmra.mrb[4].mxu1 %vm695_vm15, %v1079_v23 }
 0x14f   :  { %1243 = vmatpush3.bf16.msra.mxu1 %v1306_v33  ;;  %1250 = vmatprep.mubr.msk.bf16.mxu1 %vm695_vm15, %v1096_v26 }
 0x150   :  { %1244 = vmatprep.subr.bf16.mxu1 %v1307_v25 }
 0x153   :  { %1245 = vmatpush3.bf16.msra.mxu1 %v1307_v25 }
 0x154   :  { %1246 = vmatprep.subr.bf16.mxu1 %v1308_v27 }
 0x157   :  { %1247 = vmatpush3.bf16.msra.mxu1 %v1308_v27 }
 0x158   :  { %1248 = vmatprep.subr.bf16.mxu1 %v1309_v29 }
 0x15b   :  { %1249 = vmatpush3.bf16.msra.mxu1 %v1309_v29 }
 0x15e   :  { %1251 = vmatmul.mubr.msk.bf16.vlgmr.msra.gmra.mrb[4].mxu1 %vm695_vm15, %v1097_v37 }
 0x231   :  { %v1252_v39 = vpop.f32.mrb[4].mxu1 }
 0x232   :  { %v967_v42 = vmul.f32 %v1252_v39, %v1104_v38  ;;  %v939_v43 = vpop.f32.mrb[5].mxu1 }
 0x233   :  { %v965_v44 = vmul.f32 %v1104_v38, %v939_v43  ;;  %v1253_v45 = vpop.f32.mrb[6].mxu1 }
 0x234   :  { %v978_v46 = vadd.f32 %v1105_v41, %v967_v42  ;;  %v968_v47 = vmul.f32 %v1253_v45, %v1104_v38  ;;  %v942_v49 = vpop.f32.mrb[7].mxu1 }
 0x235   :  { %v976_v20 = vadd.f32 %v1105_v41, %v965_v44  ;;  %v966_v48 = vmul.f32 %v1104_v38, %v942_v49 }
 0x236   :  { %v982_v50 = vmax.f32 %v978_v46, 0.0  ;;  %v979_v51 = vadd.f32 %v1105_v41, %v968_v47 }
 0x237   :  { %v980_v52 = vmax.f32 %v976_v20, 0.0  ;;  %v977_v53 = vadd.f32 %v1105_v41, %v966_v48 }
 0x238   :  { %986 = vst [vmem:[%s1638_s7 + $0x10] sm:$0xff] %v982_v50  ;;  %v983_v54 = vmax.f32 %v979_v51, 0.0 }
 0x239   :  { %984 = vst [vmem:[%s1638_s7] sm:$0xff] %v980_v52  ;;  %v981_v55 = vmax.f32 %v977_v53, 0.0 }
 0x23a   :  { %987 = vst [vmem:[%s1638_s7 + $0x18] sm:$0xff] %v983_v54 }
 0x23b   :  { %985 = vst [vmem:[%s1638_s7 + $0x8] sm:$0xff] %v981_v55 }

</bundles_post_ra>
